<compile_context>
chip_gen: v7x
topology: tpu7x:2x2x1
jax: 0.10.0
libtpu: 0.0.40
codegen_flags: <defaults>
</compile_context>

<pallas_src>
import jax
import jax.numpy as jnp
from jax.experimental import pallas as pl
from jax.experimental.pallas import tpu as pltpu

LANE = 128


def _round_up(x, m):
    return (x + m - 1) // m * m


def _pick_row_tile(M):
    """Rows per grid step.  Per perf feedback: one step for small M (each grid
    step costs ~0.35us of pure overhead on a single TensorCore and small tiles
    underfill the MXU); for large M use 256-1024 row tiles."""
    if M <= 512:
        return M
    for tm in (512, 1024, 256, 128):
        if M % tm == 0:
            return tm
    return M  # fallback: single full-extent block


# ----------------------------------------------------------------------------
# Fused kernel for one (level, row-tile) grid step.
#   x_ref : (TM, Cp)  f32 sampled features (channel padded to Cp)
#   w1_ref: (Cp, NCp) bf16/f32   b1_ref: (1, NCp) f32
#   w2_ref: (NCp, Cp) bf16/f32   b2_ref: (1, Cp)  f32
#   xn_ref: (TM, Cp)  l2norm(x)      pn_ref: (TM, Cp)  l2norm(mlp(x))
# The 256-wide hidden activation never leaves VMEM.
# ----------------------------------------------------------------------------
def _mlp_l2norm_kernel(x_ref, w1_ref, b1_ref, w2_ref, b2_ref, xn_ref, pn_ref):
    eps = 1e-7
    x = x_ref[...]                     # f32 (kept f32 for the exact L2 norm)
    w1 = w1_ref[...]
    w2 = w2_ref[...]
    mm_dtype = w1.dtype                # bf16 by default -> MXU-native operands

    # MLP: Linear -> ReLU -> Linear, f32 accumulation on the MXU.
    h = jnp.dot(x.astype(mm_dtype), w1, preferred_element_type=jnp.float32)
    h = jnp.maximum(h + b1_ref[...], 0.0)
    p = jnp.dot(h.astype(mm_dtype), w2, preferred_element_type=jnp.float32)
    p = p + b2_ref[...]

    # Normalize(power=2): v / (||v||_2 + 1e-7) over channel lanes.  Zero pad
    # lanes contribute nothing to the squared sums, so this is exact.
    inv_x = pl.reciprocal(
        jnp.sqrt(jnp.sum(x * x, axis=-1, keepdims=True)) + eps, approx=False)
    inv_p = pl.reciprocal(
        jnp.sqrt(jnp.sum(p * p, axis=-1, keepdims=True)) + eps, approx=False)

    xn_ref[...] = (x * inv_x).astype(xn_ref.dtype)
    pn_ref[...] = (p * inv_p).astype(pn_ref.dtype)


def fused_mlp_l2norm(x_stack, w1, b1, w2, b2):
    """Single launch over all levels.
    x_stack: (L, M, Cp) f32;  w1: (L, Cp, NCp);  b1: (L, 1, NCp);
    w2: (L, NCp, Cp);  b2: (L, 1, Cp).
    Returns (xn, pn), each (L, M, Cp) f32."""
    L, M, Cp = x_stack.shape
    NCp = w1.shape[2]
    TM = _pick_row_tile(M)
    grid = (L, M // TM)

    wbytes = (w1.size * w1.dtype.itemsize + w2.size * w2.dtype.itemsize
              + b1.size * b1.dtype.itemsize + b2.size * b2.dtype.itemsize)
    cost = pl.CostEstimate(
        flops=int(4 * L * M * Cp * NCp + 8 * L * M * (Cp + NCp)),
        transcendentals=int(2 * L * M),
        bytes_accessed=int(x_stack.size * 4 + wbytes + 2 * L * M * Cp * 4),
    )

    xn, pn = pl.pallas_call(
        _mlp_l2norm_kernel,
        out_shape=(jax.ShapeDtypeStruct((L, M, Cp), jnp.float32),
                   jax.ShapeDtypeStruct((L, M, Cp), jnp.float32)),
        grid_spec=pltpu.PrefetchScalarGridSpec(
            num_scalar_prefetch=0,
            grid=grid,
            in_specs=[
                pl.BlockSpec((None, TM, Cp), lambda l, i: (l, i, 0)),
                pl.BlockSpec((None, Cp, NCp), lambda l, i: (l, 0, 0)),
                pl.BlockSpec((None, 1, NCp), lambda l, i: (l, 0, 0)),
                pl.BlockSpec((None, NCp, Cp), lambda l, i: (l, 0, 0)),
                pl.BlockSpec((None, 1, Cp), lambda l, i: (l, 0, 0)),
            ],
            out_specs=[
                pl.BlockSpec((None, TM, Cp), lambda l, i: (l, i, 0)),
                pl.BlockSpec((None, TM, Cp), lambda l, i: (l, i, 0)),
            ],
        ),
        compiler_params=pltpu.CompilerParams(
            dimension_semantics=("parallel", "parallel")),
        cost_estimate=cost,
    )(x_stack, w1, b1, w2, b2)
    return xn, pn


# ----------------------------------------------------------------------------
# One-time parameter preparation (padding + dtype cast + level stacking).
# Done once at setup, not per forward (perf feedback).
# ----------------------------------------------------------------------------
def prepare_mlp_params(params, weight_dtype=jnp.bfloat16, lane=LANE):
    """params[i] = (w1, b1, w2, b2) with w1:(C_i, nc), w2:(nc, C_i).
    Returns padded weights stacked along a level axis."""
    Cs = [w1.shape[0] for (w1, _, _, _) in params]
    NCs = [w1.shape[1] for (w1, _, _, _) in params]
    Cp = _round_up(max(Cs), lane)
    NCp = _round_up(max(NCs), lane)

    w1s, b1s, w2s, b2s = [], [], [], []
    for (w1, b1, w2, b2) in params:
        C, NC = w1.shape
        w1s.append(jnp.pad(w1.astype(jnp.float32),
                           ((0, Cp - C), (0, NCp - NC))).astype(weight_dtype))
        b1s.append(jnp.pad(b1.astype(jnp.float32),
                           (0, NCp - NC)).reshape(1, NCp))
        w2s.append(jnp.pad(w2.astype(jnp.float32),
                           ((0, NCp - NC), (0, Cp - C))).astype(weight_dtype))
        b2s.append(jnp.pad(b2.astype(jnp.float32),
                           (0, Cp - C)).reshape(1, Cp))
    return {
        "w1": jnp.stack(w1s), "b1": jnp.stack(b1s),
        "w2": jnp.stack(w2s), "b2": jnp.stack(b2s),
        "channels": tuple(Cs), "Cp": Cp, "NCp": NCp,
    }


# ----------------------------------------------------------------------------
# PatchSampleS.forward (use_mlp=True branch, weight_map=None)
# ----------------------------------------------------------------------------
def patch_sample_s_forward(feats, prepared_params, num_patches=64,
                           patch_ids=None, key=None):
    """feats: list of (B, C, H, W) arrays (NCHW).  prepared_params: output of
    prepare_mlp_params.  Returns (return_feats, return_p_feats, return_ids)."""
    assert num_patches > 0  # TODO(synk): num_patches==0 reshape-back branch not implemented.
    if key is None:
        key = jax.random.PRNGKey(0)

    Cp = prepared_params["Cp"]
    channels = prepared_params["channels"]
    L = len(feats)

    return_ids, x_stacks, Ms = [], [], []
    for feat_id, feat in enumerate(feats):
        B, C, H, W = feat.shape
        if patch_ids is not None:
            patch_id = patch_ids[feat_id]
        else:
            key, sub = jax.random.split(key)
            patch_id = jax.random.permutation(sub, H * W)[: min(num_patches, H * W)]

        # Gather BEFORE transposing (perf feedback): only B*C*P elements move,
        # no full NHWC copy of the feature map.  Indexing into H*W matches the
        # reference's permute->flatten->index order exactly.
        gathered = feat.reshape(B, C, H * W)[:, :, patch_id]            # (B, C, P)
        x_sample = jnp.transpose(gathered, (0, 2, 1)).reshape(-1, C)    # (B*P, C)

        x_stacks.append(jnp.pad(x_sample, ((0, 0), (0, Cp - C))))
        Ms.append(x_sample.shape[0])
        return_ids.append(patch_id)

    return_feats, return_p_feats = [], []
    if len(set(Ms)) == 1:
        # All levels in ONE pallas_call (perf feedback).
        x_stack = jnp.stack(x_stacks)                                   # (L, M, Cp)
        xn, pn = fused_mlp_l2norm(
            x_stack, prepared_params["w1"], prepared_params["b1"],
            prepared_params["w2"], prepared_params["b2"])
        for i in range(L):
            return_feats.append(xn[i, :, :channels[i]])
            return_p_feats.append(pn[i, :, :channels[i]])
    else:
        # Fallback for heterogeneous patch counts: one launch per level.
        for i in range(L):
            xn, pn = fused_mlp_l2norm(
                x_stacks[i][None], prepared_params["w1"][i:i + 1],
                prepared_params["b1"][i:i + 1], prepared_params["w2"][i:i + 1],
                prepared_params["b2"][i:i + 1])
            return_feats.append(xn[0, :, :channels[i]])
            return_p_feats.append(pn[0, :, :channels[i]])

    # TODO(synk): weight_map branch (F.interpolate 'area' + exp + mean-standardize
    # + gather) not implemented; callers here pass weight_map=None.
    return return_feats, return_p_feats, return_ids


# ----------------------------------------------------------------------------
# Pure-JAX references for validation (original permute-then-gather order).
# ----------------------------------------------------------------------------
def reference_forward(feats, params, patch_ids, mm_dtype=jnp.float32):
    ref_x, ref_p = [], []
    for feat_id, feat in enumerate(feats):
        B, C, H, W = feat.shape
        fr = jnp.transpose(feat, (0, 2, 3, 1)).reshape(B, H * W, C)
        x = fr[:, patch_ids[feat_id], :].reshape(-1, C)
        w1, b1, w2, b2 = params[feat_id]
        h = jnp.dot(x.astype(mm_dtype), w1.astype(mm_dtype),
                    preferred_element_type=jnp.float32) + b1
        h = jnp.maximum(h, 0.0)
        p = jnp.dot(h.astype(mm_dtype), w2.astype(mm_dtype),
                    preferred_element_type=jnp.float32) + b2
        xn = x / (jnp.sqrt(jnp.sum(x * x, axis=-1, keepdims=True)) + 1e-7)
        pn = p / (jnp.sqrt(jnp.sum(p * p, axis=-1, keepdims=True)) + 1e-7)
        ref_x.append(xn)
        ref_p.append(pn)
    return ref_x, ref_p


if __name__ == "__main__":
    key = jax.random.PRNGKey(0)

    # Small config consistent with the module: 2 encoder feature levels,
    # batch=2, channels 32/64, spatial 16/8, MLP hidden nc=256, num_patches=64.
    B, nc, num_patches = 2, 256, 64
    feat_shapes = [(B, 32, 16, 16), (B, 64, 8, 8)]

    feats, params, patch_ids = [], [], []
    for (b, c, h, w) in feat_shapes:
        key, kf, kw1, kb1, kw2, kb2, kp = jax.random.split(key, 7)
        feats.append(jax.random.normal(kf, (b, c, h, w), jnp.float32))
        s1 = (2.0 / (c + nc)) ** 0.5
        s2 = (2.0 / (nc + c)) ** 0.5
        params.append((
            s1 * jax.random.normal(kw1, (c, nc), jnp.float32),
            0.1 * jax.random.normal(kb1, (nc,), jnp.float32),
            s2 * jax.random.normal(kw2, (nc, c), jnp.float32),
            0.1 * jax.random.normal(kb2, (c,), jnp.float32),
        ))
        patch_ids.append(jax.random.permutation(kp, h * w)[: min(num_patches, h * w)])

    ref_x, ref_p = reference_forward(feats, params, patch_ids, jnp.float32)

    # --- Run 1: f32 matmul operands -> tight check vs the f32 reference -------
    prep_f32 = prepare_mlp_params(params, weight_dtype=jnp.float32)
    xf, pf, _ = patch_sample_s_forward(feats, prep_f32, num_patches, patch_ids)
    xf = [jax.block_until_ready(a) for a in xf]
    pf = [jax.block_until_ready(a) for a in pf]
    for xi, pi, xr, pr, (b, c, h, w) in zip(xf, pf, ref_x, ref_p, feat_shapes):
        assert xi.shape == (b * num_patches, c), xi.shape
        assert pi.shape == (b * num_patches, c), pi.shape
        assert jnp.allclose(xi, xr, atol=1e-5, rtol=1e-5)
        assert jnp.allclose(pi, pr, atol=1e-4, rtol=1e-4)

    # --- Run 2: default bf16 matmul operands (perf feedback, v5e/v6e/v7x) -----
    prep_bf16 = prepare_mlp_params(params)              # bf16 weights in HBM
    xb, pb, out_ids = patch_sample_s_forward(feats, prep_bf16, num_patches, patch_ids)
    xb = [jax.block_until_ready(a) for a in xb]
    pb = [jax.block_until_ready(a) for a in pb]
    ref_pb = reference_forward(feats, params, patch_ids, jnp.bfloat16)[1]
    for xi, pi, xr, pbr, pr in zip(xb, pb, ref_x, ref_pb, ref_p):
        assert jnp.allclose(xi, xr, atol=1e-5, rtol=1e-5)     # x path stays f32 exact
        assert jnp.allclose(pi, pbr, atol=2e-3, rtol=2e-3)    # matches bf16-operand ref
        assert jnp.allclose(pi, pr, atol=3e-2, rtol=3e-2)     # sanity vs full-f32 ref

    print("KERNEL_OK")
</pallas_src>

<mosaic_0001>
module attributes {stable_mosaic.version = 11 : i64} {
  func.func @_mlp_l2norm_kernel(%arg0: i32, %arg1: i32, %arg2: memref<1x128x128xf32, #tpu.memory_space<vmem>>, %arg3: memref<1x128x256xf32, #tpu.memory_space<vmem>>, %arg4: memref<1x1x256xf32, #tpu.memory_space<vmem>>, %arg5: memref<1x256x128xf32, #tpu.memory_space<vmem>>, %arg6: memref<1x1x128xf32, #tpu.memory_space<vmem>>, %arg7: memref<1x128x128xf32, #tpu.memory_space<vmem>>, %arg8: memref<1x128x128xf32, #tpu.memory_space<vmem>>) attributes {dimension_semantics = [#tpu.dimension_semantics<parallel>, #tpu.dimension_semantics<parallel>], iteration_bounds = array<i64: 2, 1>, scalar_prefetch = 0 : i64, scratch_operands = 0 : i64, tpu.core_type = #tpu.core_type<tc>, window_params = [{transform_indices = @transform_0, window_bounds = array<i64: 1, 128, 128>}, {transform_indices = @transform_1, window_bounds = array<i64: 1, 128, 256>}, {transform_indices = @transform_2, window_bounds = array<i64: 1, 1, 256>}, {transform_indices = @transform_3, window_bounds = array<i64: 1, 256, 128>}, {transform_indices = @transform_4, window_bounds = array<i64: 1, 1, 128>}, {transform_indices = @transform_5, window_bounds = array<i64: 1, 128, 128>}, {transform_indices = @transform_6, window_bounds = array<i64: 1, 128, 128>}]} {
    %c0 = arith.constant 0 : index
    %c0_0 = arith.constant 0 : index
    %c0_1 = arith.constant 0 : index
    %0 = vector.load %arg2[%c0, %c0_0, %c0_1] : memref<1x128x128xf32, #tpu.memory_space<vmem>>, vector<1x128x128xf32>
    %1 = vector.shape_cast %0 : vector<1x128x128xf32> to vector<128x128xf32>
    %c0_2 = arith.constant 0 : index
    %c0_3 = arith.constant 0 : index
    %c0_4 = arith.constant 0 : index
    %2 = vector.load %arg3[%c0_2, %c0_3, %c0_4] : memref<1x128x256xf32, #tpu.memory_space<vmem>>, vector<1x128x256xf32>
    %3 = vector.shape_cast %2 : vector<1x128x256xf32> to vector<128x256xf32>
    %c0_5 = arith.constant 0 : index
    %c0_6 = arith.constant 0 : index
    %c0_7 = arith.constant 0 : index
    %4 = vector.load %arg5[%c0_5, %c0_6, %c0_7] : memref<1x256x128xf32, #tpu.memory_space<vmem>>, vector<1x256x128xf32>
    %5 = vector.shape_cast %4 : vector<1x256x128xf32> to vector<256x128xf32>
    %cst = arith.constant dense<0.000000e+00> : vector<128x256xf32>
    %6 = tpu.matmul %1, %3, %cst {dimension_numbers = #tpu.dot_dimension_numbers<[1], [0], [0], [1], [0, 0, 1, 1], [], []>} : vector<128x128xf32>, vector<128x256xf32>, vector<128x256xf32> -> vector<128x256xf32>
    %c0_8 = arith.constant 0 : index
    %c0_9 = arith.constant 0 : index
    %c0_10 = arith.constant 0 : index
    %7 = vector.load %arg4[%c0_8, %c0_9, %c0_10] : memref<1x1x256xf32, #tpu.memory_space<vmem>>, vector<1x1x256xf32>
    %8 = vector.shape_cast %7 : vector<1x1x256xf32> to vector<1x256xf32>
    %9 = vector.broadcast %8 : vector<1x256xf32> to vector<128x256xf32>
    %10 = arith.addf %6, %9 : vector<128x256xf32>
    %cst_11 = arith.constant 0.000000e+00 : f32
    %11 = vector.broadcast %cst_11 : f32 to vector<128x256xf32>
    %12 = arith.maximumf %10, %11 : vector<128x256xf32>
    %cst_12 = arith.constant dense<0.000000e+00> : vector<128x128xf32>
    %13 = tpu.matmul %12, %5, %cst_12 {dimension_numbers = #tpu.dot_dimension_numbers<[1], [0], [0], [1], [0, 0, 1, 1], [], []>} : vector<128x256xf32>, vector<256x128xf32>, vector<128x128xf32> -> vector<128x128xf32>
    %c0_13 = arith.constant 0 : index
    %c0_14 = arith.constant 0 : index
    %c0_15 = arith.constant 0 : index
    %14 = vector.load %arg6[%c0_13, %c0_14, %c0_15] : memref<1x1x128xf32, #tpu.memory_space<vmem>>, vector<1x1x128xf32>
    %15 = vector.shape_cast %14 : vector<1x1x128xf32> to vector<1x128xf32>
    %16 = vector.broadcast %15 : vector<1x128xf32> to vector<128x128xf32>
    %17 = arith.addf %13, %16 : vector<128x128xf32>
    %18 = arith.mulf %1, %1 : vector<128x128xf32>
    %cst_16 = arith.constant dense<0.000000e+00> : vector<128xf32>
    %19 = vector.multi_reduction <add>, %18, %cst_16 [1] : vector<128x128xf32> to vector<128xf32>
    %20 = vector.shape_cast %19 : vector<128xf32> to vector<128x1xf32>
    %21 = math.sqrt %20 : vector<128x1xf32>
    %cst_17 = arith.constant 1.000000e-07 : f32
    %22 = vector.broadcast %cst_17 : f32 to vector<128x1xf32>
    %23 = arith.addf %21, %22 : vector<128x1xf32>
    %24 = tpu.reciprocal %23 : vector<128x1xf32> -> vector<128x1xf32>
    %25 = arith.mulf %17, %17 : vector<128x128xf32>
    %cst_18 = arith.constant dense<0.000000e+00> : vector<128xf32>
    %26 = vector.multi_reduction <add>, %25, %cst_18 [1] : vector<128x128xf32> to vector<128xf32>
    %27 = vector.shape_cast %26 : vector<128xf32> to vector<128x1xf32>
    %28 = math.sqrt %27 : vector<128x1xf32>
    %cst_19 = arith.constant 1.000000e-07 : f32
    %29 = vector.broadcast %cst_19 : f32 to vector<128x1xf32>
    %30 = arith.addf %28, %29 : vector<128x1xf32>
    %31 = tpu.reciprocal %30 : vector<128x1xf32> -> vector<128x1xf32>
    %32 = vector.broadcast %24 : vector<128x1xf32> to vector<128x128xf32>
    %33 = arith.mulf %1, %32 : vector<128x128xf32>
    %c0_20 = arith.constant 0 : index
    %c0_21 = arith.constant 0 : index
    %c0_22 = arith.constant 0 : index
    %34 = vector.load %arg7[%c0_20, %c0_21, %c0_22] : memref<1x128x128xf32, #tpu.memory_space<vmem>>, vector<1x128x128xf32>
    %35 = vector.shape_cast %34 : vector<1x128x128xf32> to vector<128x128xf32>
    %36 = vector.shape_cast %33 : vector<128x128xf32> to vector<1x128x128xf32>
    tpu.vector_store %arg7[%c0_20, %c0_21, %c0_22], %36 {strides = array<i32>} : memref<1x128x128xf32, #tpu.memory_space<vmem>>, vector<1x128x128xf32>,
    %37 = vector.broadcast %31 : vector<128x1xf32> to vector<128x128xf32>
    %38 = arith.mulf %17, %37 : vector<128x128xf32>
    %c0_23 = arith.constant 0 : index
    %c0_24 = arith.constant 0 : index
    %c0_25 = arith.constant 0 : index
    %39 = vector.load %arg8[%c0_23, %c0_24, %c0_25] : memref<1x128x128xf32, #tpu.memory_space<vmem>>, vector<1x128x128xf32>
    %40 = vector.shape_cast %39 : vector<1x128x128xf32> to vector<128x128xf32>
    %41 = vector.shape_cast %38 : vector<128x128xf32> to vector<1x128x128xf32>
    tpu.vector_store %arg8[%c0_23, %c0_24, %c0_25], %41 {strides = array<i32>} : memref<1x128x128xf32, #tpu.memory_space<vmem>>, vector<1x128x128xf32>,
    return
  }
  func.func @transform_0(%arg0: i32, %arg1: i32) -> (i32, i32, i32) {
    %c0_i32 = arith.constant 0 : i32
    %c0_i32_0 = arith.constant 0 : i32
    return %arg0, %arg1, %c0_i32 : i32, i32, i32
  }
  func.func @transform_1(%arg0: i32, %arg1: i32) -> (i32, i32, i32) {
    %c0_i32 = arith.constant 0 : i32
    %c0_i32_0 = arith.constant 0 : i32
    %c0_i32_1 = arith.constant 0 : i32
    return %arg0, %c0_i32, %c0_i32_0 : i32, i32, i32
  }
  func.func @transform_2(%arg0: i32, %arg1: i32) -> (i32, i32, i32) {
    %c0_i32 = arith.constant 0 : i32
    %c0_i32_0 = arith.constant 0 : i32
    %c0_i32_1 = arith.constant 0 : i32
    return %arg0, %c0_i32, %c0_i32_0 : i32, i32, i32
  }
  func.func @transform_3(%arg0: i32, %arg1: i32) -> (i32, i32, i32) {
    %c0_i32 = arith.constant 0 : i32
    %c0_i32_0 = arith.constant 0 : i32
    %c0_i32_1 = arith.constant 0 : i32
    return %arg0, %c0_i32, %c0_i32_0 : i32, i32, i32
  }
  func.func @transform_4(%arg0: i32, %arg1: i32) -> (i32, i32, i32) {
    %c0_i32 = arith.constant 0 : i32
    %c0_i32_0 = arith.constant 0 : i32
    %c0_i32_1 = arith.constant 0 : i32
    return %arg0, %c0_i32, %c0_i32_0 : i32, i32, i32
  }
  func.func @transform_5(%arg0: i32, %arg1: i32) -> (i32, i32, i32) {
    %c0_i32 = arith.constant 0 : i32
    %c0_i32_0 = arith.constant 0 : i32
    return %arg0, %arg1, %c0_i32 : i32, i32, i32
  }
  func.func @transform_6(%arg0: i32, %arg1: i32) -> (i32, i32, i32) {
    %c0_i32 = arith.constant 0 : i32
    %c0_i32_0 = arith.constant 0 : i32
    return %arg0, %arg1, %c0_i32 : i32, i32, i32
  }
}

</mosaic_0001>

<bundles_post_ra>
// kernel: tpu_custom_call.1
= control target key start
LH: loop header
LB: loop body
LE: loop exit
PB: predicated region body
PF: predicated region fallthrough
CT: control target
= control target key end

     0   :  { %s2978_s0 = inlined_call_operand.hbm [shape: f32[2,128,128], index: 0, kind: input, shape index: {}]   ;;  %s2979_s1 = inlined_call_operand.hbm [shape: f32[2,128,256], index: 1, kind: input, shape index: {}]   ;;  %s2980_s2 = inlined_call_operand.vmem [shape: f32[2,1,256], index: 2, kind: input, shape index: {}]   ;;  %s2981_s3 = inlined_call_operand.hbm [shape: f32[2,256,128], index: 3, kind: input, shape index: {}]   ;;  %s2982_s4 = inlined_call_operand.vmem [shape: f32[2,1,128], index: 4, kind: input, shape index: {}]   ;;  %s2983_s5 = inlined_call_operand.hbm [shape: f32[2,128,128], index: 5, kind: output, shape index: {0}]   ;;  %s2984_s6 = inlined_call_operand.hbm [shape: f32[2,128,128], index: 6, kind: output, shape index: {1}]  }
   0x1   :  { %2993 = sst [smem:[#allocation20_spill]] %s2979_s1 }
   0x2   :  { %12 = vsyncpa [#allocation3], 0 }
   0x3   :  { %14 = vsyncpa [#allocation3 + $0x1], 0 }
   0x4   :  { %15 = vsyncpa [#allocation6], 0 }
   0x5   :  { %17 = vsyncpa [#allocation6 + $0x1], 0 }
   0x6   :  { %18 = vsyncpa [#allocation4], 0 }
   0x7   :  { %20 = vsyncpa [#allocation4 + $0x1], 0 }
   0x8   :  { %21 = vsyncpa [#allocation10], 0 }
   0x9   :  { %23 = vsyncpa [#allocation10 + $0x1], 0  ;;  %s2169_s21 = smov 0   ;;  %s2171_s22 = smov 0  }
   0xa   :  { %s2173_s23 = smov 0   ;;  %s2175_s24 = smov 0  }
   0xb   :  { %s2177_s25 = smov 0   ;;  %s2179_s26 = smov 0  }
   0xc LB: > { %2994 = sst [smem:[#allocation15_spill]] %s2108_s23  ;;  %s2200_s27 = sadd.s32 4294967295, %s2120_s26   ;;  %s2120_s26 = sphi %s2179_s26, %s29_s26   ;;  %s2116_s25 = sphi %s2177_s25, %s3018_s25   ;;  %s2112_s24 = sphi %s2175_s24, %s3017_s24   ;;  %s2108_s23 = sphi %s2173_s23, %s3016_s23   ;;  %s2104_s22 = sphi %s2171_s22, %s3020_s22   ;;  %s2100_s21 = sphi %s2169_s21, %s3019_s21  }
   0xd   : > { %2995 = sst [smem:[#allocation16_spill]] %s2116_s25  ;;  %s1523_s28 = sadd.s32 4294967294, %s2120_s26  }
   0xe   : > { %s41_s29 = sadd.s32 1, %s2116_s25  ;;  %s50_s30 = sadd.s32 1, %s2108_s23 }
   0xf   : > { %p43_p0 = scmp.ge.s32.totalorder %s41_s29, 2  ;;  %p57_p1 = scmp.ne.s32.totalorder %s2108_s23, %s2104_s22 }
  0x10   : > { %p58_p2 = scmp.eq.s32.totalorder %s2120_s26, 0  ;;  %p63_p3 = scmp.ne.s32.totalorder %s2104_s22, %s2100_s21 }
  0x11   : > { %s3022_s29 = smov (%p43_p0, %s41_s29), 0  ;;  %p64_p5 = scmp.eq.s32.totalorder %s2200_s27, 0 }
  0x12   : > { %2996 = sst [smem:[#allocation17_spill]] %s3022_s29  ;;  %p2212_p4 = por %p58_p2, %p57_p1 }
  0x13   : > { %s45_s8 = ssub.s32 %s2116_s25, %s3022_s29  ;;  %p193_p6 = scmp.eq.s32.totalorder %s2200_s27, 1 }
  0x14   : > { %p48_p7 = scmp.eq.s32.totalorder %s45_s8, 0  ;;  %p2220_p8 = por %p64_p5, %p63_p3 }
  0x15   : > { %p2224_p9 = por %p193_p6, %p57_p1  ;;  %p199_p10 = scmp.eq.s32.totalorder %s1523_s28, 1 }
  0x16   : > { %s2998_s9 = scalar_select %p2220_p8, 1, 0 }
  0x17   : > { %s2999_s10 = scalar_select %p2224_p9, 1, 0 }
  0x18   : > { %s2229_s11 = scalar_select %p48_p7, %s2108_s23, %s50_s30  }
  0x19   : > { %p2231_p11 = por %p199_p10, %p63_p3  ;;  %p1727_p13 = scmp.lt.s32.totalorder %s2120_s26, 2 }
  0x1a   : > { %3000 = sst [smem:[#allocation18_spill]] %s2229_s11  ;;  %s2238_s13 = sand.u32 1, %s2108_s23  }
  0x1b   : > { %s3001_s12 = scalar_select %p2231_p11, 1, 0 }
  0x1c   : > { %s270_s14 = sand.u32 1, %s2120_s26   ;;  %s2986_s15 = sshll.u32 %s2238_s13, 8 }
  0x1d   : > { %3002 = sst [smem:[#allocation19_spill]] %s3001_s12  ;;  %p2244_p0 = pnand %p1727_p13, %p2212_p4 }
  0x1e   : > { %s2987_s17 = sshll.u32 %s2116_s25, 12  ;;  %s3004_s1 = sld [smem:[#allocation20_spill]] }
  0x1f   : > { %s274_s28 = scalar_lea.vmem [#allocation5], %s2986_s15  ;;  %s2260_s7 = scalar_lea.sflag [#allocation6], %s270_s14 }
  0x20   : > { %s281_s30 = sshll.u32 %s274_s28, 4  ;;  %p2266_p2 = pneg %p2244_p0  ;;  %s2258_s30 = int_to_ptr.vmem [resolvable:$true] %s281_s30 }
  0x24   : > { %s2254_s20 = scalar_lea.hbm %s3004_s1, %s2987_s17  ;;  %s1917_s15 = scalar_lea.hbm %s3004_s1, 8192 }
  0x25   : > { %s1912_s8 = scalar_lea.hbm %s2254_s20, 4096  ;;  %p1918_p5 = scmp.lt.u32.totalorder %s2254_s20, %s3004_s1 }
  0x26   : > { %p1913_p1 = scmp.ne.s32.totalorder %s2254_s20, %s1912_s8  ;;  %p1919_p6 = scmp.lt.u32.totalorder %s1917_s15, %s1912_s8 }
  0x27   : > { %p1921_p10 = scmp.lt.u32.totalorder %s1912_s8, %s2254_s20 }
  0x28   : > { %p1915_p3 = pnand %p2266_p2, %p1913_p1  ;;  %p1920_p7 = por %p1919_p6, %p1918_p5 }
  0x2a   : > { %p1916_p4 = pneg %p1915_p3  ;;  %p1922_p13 = por %p1921_p10, %p1920_p7 }
  0x2c   : > { %p1923_p12 = pnand %p1922_p13, %p1916_p4 }
  0x2e   : > { %1926 = shalt.err (!%p1923_p12)
}
  0x2f   : > { %s1927_s14 = scalar_lea.vmem %s2258_s30, 4096  ;;  %s2122_s18 = smov [#allocation5]  }
  0x30   : > { %p1928_p1 = scmp.ne.s32.totalorder %s2258_s30, %s1927_s14  ;;  %s1932_s19 = sshll.u32 %s2122_s18, 4  ;;  %s1933_s19 = int_to_ptr.vmem [resolvable:$false] %s1932_s19 }
  0x31   : > { %s1934_s17 = scalar_lea.vmem %s1933_s19, 8192  ;;  %p1935_p9 = scmp.lt.s32.totalorder %s2258_s30, %s1933_s19 }
  0x32   : > { %p1930_p3 = pnand %p1928_p1, %p2266_p2  ;;  %p1936_p8 = scmp.lt.s32.totalorder %s1934_s17, %s1927_s14 }
  0x34   : > { %p1931_p11 = pneg %p1930_p3  ;;  %p1937_p5 = por %p1936_p8, %p1935_p9 }
  0x36   : > { %p1938_p6 = pnand %p1937_p5, %p1931_p11 }
  0x38   : > { %1941 = shalt.err (!%p1938_p6)
}
  0x39   : > { %s2123_s15 = smov 256   ;;  %s2124_s8 = smov 16  }
  0x3a   : > { %1716 = dma.hbm_to_vmem [thread:$0]  (!%p2244_p0), %s2254_s20, 4096, %s2258_s30, %s2260_s7, %s2123_s15, %s2123_s15, %s2124_s8  }
  0x3b   : > { %s3006_s28 = sshll.u32 %s2116_s25, 12  ;;  %s3007_s17 = sshll.u32 %s2238_s13, 8 }
  0x3c   : > { %s2295_s19 = scalar_lea.hbm %s2981_s3, %s3006_s28  ;;  %s302_s1 = scalar_lea.vmem [#allocation7], %s3007_s17 }
  0x3d   : > { %s309_s11 = sshll.u32 %s302_s1, 4  ;;  %p1535_p8 = scmp.ge.s32.totalorder %s2120_s26, 1  ;;  %s2300_s11 = int_to_ptr.vmem [resolvable:$true] %s309_s11 }
  0x3e   : > { %p323_p9 = scmp.lt.s32.totalorder %s2120_s26, 3  ;;  %s1526_s12 = sshll.u32 %s2238_s13, 7 }
  0x3f   : > { %s1551_s20 = sshll.u32 %s2116_s25, 11  ;;  %s251_s1 = scalar_lea.vmem [#allocation2], %s1526_s12 }
  0x40   : > { %p2303_p11 = pnand %p1535_p8, %p323_p9  ;;  %s2312_s8 = scalar_lea.hbm %s2978_s0, %s1551_s20 }
  0x41   : > { %s260_s28 = sshll.u32 %s251_s1, 4  ;;  %s248_s14 = scalar_lea.sflag [#allocation3], %s2238_s13  ;;  %s2314_s28 = int_to_ptr.vmem [resolvable:$true] %s260_s28 }
  0x42   : > { %s3008_s23 = scalar_select %p2303_p11, 1, 0 }
  0x43   : > { %s1942_s18 = scalar_lea.hbm %s2312_s8, 2048  ;;  %s1947_s30 = scalar_lea.hbm %s2978_s0, 4096 }
  0x44   : > { %p1943_p12 = scmp.ne.s32.totalorder %s2312_s8, %s1942_s18  ;;  %p1948_p10 = scmp.lt.u32.totalorder %s2312_s8, %s2978_s0 }
  0x45   : > { %p1949_p13 = scmp.lt.u32.totalorder %s1947_s30, %s1942_s18  ;;  %p1951_p3 = scmp.lt.u32.totalorder %s1942_s18, %s2312_s8 }
  0x46   : > { %p1945_p4 = pnand %p1943_p12, %p2266_p2 }
  0x47   : > { %p1950_p1 = por %p1949_p13, %p1948_p10 }
  0x48   : > { %p1946_p7 = pneg %p1945_p4 }
  0x49   : > { %p1952_p5 = por %p1951_p3, %p1950_p1 }
  0x4b   : > { %p1953_p6 = pnand %p1952_p5, %p1946_p7 }
  0x4d   : > { %1956 = shalt.err (!%p1953_p6)
}
  0x4e   : > { %s1957_s12 = scalar_lea.vmem %s2314_s28, 2048  ;;  %s2125_s25 = smov [#allocation2]  }
  0x4f   : > { %p1958_p8 = scmp.ne.s32.totalorder %s2314_s28, %s1957_s12  ;;  %s1962_s1 = sshll.u32 %s2125_s25, 4  ;;  %s1963_s1 = int_to_ptr.vmem [resolvable:$false] %s1962_s1 }
  0x50   : > { %s1964_s17 = scalar_lea.vmem %s1963_s1, 4096  ;;  %p1965_p4 = scmp.lt.s32.totalorder %s2314_s28, %s1963_s1 }
  0x51   : > { %p1960_p9 = pnand %p1958_p8, %p2266_p2  ;;  %p1966_p11 = scmp.lt.s32.totalorder %s1964_s17, %s1957_s12 }
  0x53   : > { %p1961_p12 = pneg %p1960_p9  ;;  %p1967_p10 = por %p1966_p11, %p1965_p4 }
  0x55   : > { %p1968_p13 = pnand %p1967_p10, %p1961_p12 }
  0x57   : > { %1971 = shalt.err (!%p1968_p13)
}
  0x58   : > { %s2126_s18 = smov 128   ;;  %s2127_s30 = smov 8  }
  0x59   : > { %1713 = dma.hbm_to_vmem [thread:$0]  (!%p2244_p0), %s2312_s8, 2048, %s2314_s28, %s248_s14, %s2126_s18, %s2126_s18, %s2127_s30  }
  0x5a   : > { %s1972_s20 = scalar_lea.hbm %s2295_s19, 4096  ;;  %s1977_s25 = scalar_lea.hbm %s2981_s3, 8192 }
  0x5b   : > { %p1973_p11 = scmp.ne.s32.totalorder %s2295_s19, %s1972_s20  ;;  %p1978_p3 = scmp.lt.u32.totalorder %s2295_s19, %s2981_s3 }
  0x5c   : > { %p1979_p5 = scmp.lt.u32.totalorder %s1977_s25, %s1972_s20  ;;  %p1981_p8 = scmp.lt.u32.totalorder %s1972_s20, %s2295_s19 }
  0x5d   : > { %p1975_p7 = pnand %p1973_p11, %p2266_p2 }
  0x5e   : > { %p1980_p6 = por %p1979_p5, %p1978_p3 }
  0x5f   : > { %p1976_p1 = pneg %p1975_p7 }
  0x60   : > { %p1982_p9 = por %p1981_p8, %p1980_p6 }
  0x62   : > { %p1983_p12 = pnand %p1982_p9, %p1976_p1 }
  0x64   : > { %1986 = shalt.err (!%p1983_p12)
}
  0x65   : > { %s1987_s13 = scalar_lea.vmem %s2300_s11, 4096  ;;  %s2128_s8 = smov [#allocation7]  }
  0x66   : > { %p1988_p4 = scmp.ne.s32.totalorder %s2300_s11, %s1987_s13  ;;  %s1992_s28 = sshll.u32 %s2128_s8, 4  ;;  %s1993_s28 = int_to_ptr.vmem [resolvable:$false] %s1992_s28 }
  0x67   : > { %s1994_s14 = scalar_lea.vmem %s1993_s28, 8192  ;;  %p1995_p11 = scmp.lt.s32.totalorder %s2300_s11, %s1993_s28 }
  0x68   : > { %p1990_p10 = pnand %p1988_p4, %p2266_p2  ;;  %p1996_p7 = scmp.lt.s32.totalorder %s1994_s14, %s1987_s13 }
  0x6a   : > { %p1991_p13 = pneg %p1990_p10  ;;  %p1997_p3 = por %p1996_p7, %p1995_p11 }
  0x6c   : > { %p1998_p5 = pnand %p1997_p3, %p1991_p13 }
  0x6e   : > { %2001 = shalt.err (!%p1998_p5)
}
  0x6f   : > { %1719 = dma.hbm_to_vmem [thread:$0]  (!%p2244_p0), %s2295_s19, 4096, %s2300_s11, %s2260_s7, %s2126_s18, %s2126_s18, %s2127_s30  }
  0x70   : > { %p3009_p2 = scmp.ne.s32.totalorder %s3008_s23, 0 }
  0x71   : > { %s2371_s29 = sand.u32 (!%p3009_p2), 1, %s2104_s22   ;;  %p3010_p1 = scmp.ne.s32.totalorder (!%p3009_p2), %s2998_s9, 0 }
  0x72   : > { %327 = sbr.rel (%p3009_p2) target bundleno = 843 (0x34b), region = 40  ;;  %s2374_s20 = sshll.u32 (!%p3009_p2), %s2371_s29, 7 }
  0x73   : > { %s330_s16 = scalar_lea.sflag (!%p3009_p2), [#allocation3], %s2371_s29  ;;  %s2378_s15 = scalar_lea.vmem (!%p3009_p2), [#allocation2], %s2374_s20 }
  0x79   : > { %2083 = dma.done.wait (%p3010_p1), %s330_s16, 2048  }
  0x7a   : > { %2085 = vsyncadd (%p3010_p1), %s330_s16, 4294965248  ;;  %s338_s23 = sand.u32 1, %s2200_s27   ;;  %s1537_s11 = sshll.u32 %s2371_s29, 8 }
  0x7b   : > { %s339_s7 = scalar_lea.sflag [#allocation6], %s338_s23  ;;  %s2388_s19 = scalar_lea.vmem [#allocation5], %s1537_s11 }
  0x7c   : > { %2087 = dma.done.wait (%p3010_p1), %s339_s7, 8192  }
  0x7d   : > { %2089 = vsyncadd (%p3010_p1), %s339_s7, 4294959104  ;;  %v2129_v0 = vmov 0.0   ;;  %v429_v1 = vld [vmem:[%s2388_s19 + $0x8] sm:$0xff]  ;;  %v431_v2 = vld [vmem:[%s2388_s19 + $0x18] sm:$0xff]  ;;  %s2423_s27 = scalar_lea.vmem [#allocation7], %s1537_s11  ;;  %p403_p0 = scmp.lt.s32.totalorder %s2112_s24, 1 }
  0x7e   : > { %568 = vmatprep.mubr.f32.mxu0 %v2129_v0  ;;  %v428_v3 = vld [vmem:[%s2388_s19] sm:$0xff]  ;;  %v1636_v4 = vpack.c.bf16 %v431_v2, %v429_v1  ;;  %v430_v5 = vld [vmem:[%s2388_s19 + $0x10] sm:$0xff]  ;;  %v433_v6 = vld [vmem:[%s2388_s19 + $0x28] sm:$0xff]  ;;  %s2698_s1 = scalar_lea.vmem [#allocation8], %s2374_s20  ;;  %s1554_s28 = sshll.u32 %s2112_s24, 11 }
  0x7f   : > { %v435_v7 = vld [vmem:[%s2388_s19 + $0x38] sm:$0xff]  ;;  %v1638_v8 = vpack.c.bf16 %v430_v5, %v428_v3  ;;  %v432_v10 = vld [vmem:[%s2388_s19 + $0x20] sm:$0xff]  ;;  %v434_v11 = vld [vmem:[%s2388_s19 + $0x30] sm:$0xff]  ;;  %s2570_s9 = scalar_select %p403_p0, %s2112_s24, 1 }
  0x80   : > { %v1640_v9 = vpack.c.bf16 %v435_v7, %v433_v6  ;;  %v437_v12 = vld [vmem:[%s2388_s19 + $0x48] sm:$0xff]  ;;  %1637 = vmatprep.subr.bf16.mxu0 %v1636_v4  ;;  %v439_v13 = vld [vmem:[%s2388_s19 + $0x58] sm:$0xff]  ;;  %v1642_v14 = vpack.c.bf16 %v434_v11, %v432_v10  ;;  %v436_v16 = vld [vmem:[%s2388_s19 + $0x40] sm:$0xff]  ;;  %s1318_s23 = sshll.u32 %s2698_s1, 4  ;;  %s1298_s11 = scalar_lea.sflag [#allocation4], %s2371_s29  ;;  %s2854_s23 = int_to_ptr.vmem [resolvable:$true] %s1318_s23 }
  0x81   : > { %1639 = vmatpush1.bf16.msra.mxu0 %v1638_v8  ;;  %v1644_v15 = vpack.c.bf16 %v439_v13, %v437_v12  ;;  %v438_v17 = vld [vmem:[%s2388_s19 + $0x50] sm:$0xff]  ;;  %v441_v18 = vld [vmem:[%s2388_s19 + $0x68] sm:$0xff]  ;;  %v443_v19 = vld [vmem:[%s2388_s19 + $0x78] sm:$0xff]  ;;  %s1541_s18 = sshll.u32 %s2570_s9, 1  ;;  %s409_s8 = scalar_lea.vmem %s2982_s4, %s2570_s9 }
  0x82   : > { %1641 = vmatprep.subr.bf16.mxu0 %v1640_v9  ;;  %v1646_v20 = vpack.c.bf16 %v438_v17, %v436_v16  ;;  %v1648_v21 = vpack.c.bf16 %v443_v19, %v441_v18  ;;  %v440_v22 = vld [vmem:[%s2388_s19 + $0x60] sm:$0xff]  ;;  %v442_v23 = vld [vmem:[%s2388_s19 + $0x70] sm:$0xff]  ;;  %v445_v24 = vld [vmem:[%s2388_s19 + $0x88] sm:$0xff]  ;;  %s406_s25 = scalar_lea.vmem %s2980_s2, %s1541_s18  ;;  %s2002_s7 = scalar_lea.vmem %s2854_s23, 2048 }
  0x83   : > { %v447_v25 = vld [vmem:[%s2388_s19 + $0x98] sm:$0xff]  ;;  %v1650_v26 = vpack.c.bf16 %v442_v23, %v440_v22  ;;  %v444_v28 = vld [vmem:[%s2388_s19 + $0x80] sm:$0xff]  ;;  %v446_v29 = vld [vmem:[%s2388_s19 + $0x90] sm:$0xff]  ;;  %p2003_p6 = scmp.ne.s32.totalorder %s2854_s23, %s2002_s7  ;;  %p3011_p8 = scmp.ne.s32.totalorder %s2999_s10, 0 }
  0x84   : > { %v1652_v27 = vpack.c.bf16 %v447_v25, %v445_v24  ;;  %v449_v30 = vld [vmem:[%s2388_s19 + $0xa8] sm:$0xff]  ;;  %v451_v31 = vld [vmem:[%s2388_s19 + $0xb8] sm:$0xff]  ;;  %v448_v32 = vld [vmem:[%s2388_s19 + $0xa0] sm:$0xff]  ;;  %v1654_v34 = vpack.c.bf16 %v446_v29, %v444_v28 }
  0x85   : > { %1643 = vmatpush1.bf16.msra.mxu0 %v1642_v14  ;;  %v450_v33 = vld [vmem:[%s2388_s19 + $0xb0] sm:$0xff]  ;;  %v453_v35 = vld [vmem:[%s2388_s19 + $0xc8] sm:$0xff]  ;;  %v455_v36 = vld [vmem:[%s2388_s19 + $0xd8] sm:$0xff]  ;;  %v1656_v40 = vpack.c.bf16 %v451_v31, %v449_v30  ;;  %p2004_p9 = pnand %p2003_p6, %p3011_p8 }
  0x86   : > { %1645 = vmatprep.subr.bf16.mxu0 %v1644_v15  ;;  %v476_v37 = vld [vmem:[%s2423_s27 + $0x80] sm:$0xff]  ;;  %v477_v38 = vld [vmem:[%s2423_s27 + $0x88] sm:$0xff]  ;;  %v478_v43 = vld [vmem:[%s2423_s27 + $0x90] sm:$0xff]  ;;  %v1658_v51 = vpack.c.bf16 %v450_v33, %v448_v32  ;;  %v1660_v55 = vpack.c.bf16 %v455_v36, %v453_v35 }
  0x87   : > { %v460_v39 = vld [vmem:[%s2423_s27] sm:$0xff]  ;;  %v1668_v41 = vpack.c.bf16 %v477_v38, %v476_v37  ;;  %v461_v42 = vld [vmem:[%s2423_s27 + $0x8] sm:$0xff]  ;;  %v479_v44 = vld [vmem:[%s2423_s27 + $0x98] sm:$0xff]  ;;  %p2005_p12 = pneg %p2004_p9 }
  0x88   : > { %v1670_v45 = vpack.c.bf16 %v461_v42, %v460_v39  ;;  %v1672_v46 = vpack.c.bf16 %v479_v44, %v478_v43  ;;  %v462_v47 = vld [vmem:[%s2423_s27 + $0x10] sm:$0xff]  ;;  %v463_v48 = vld [vmem:[%s2423_s27 + $0x18] sm:$0xff]  ;;  %v480_v49 = vld [vmem:[%s2423_s27 + $0xa0] sm:$0xff] }
  0x89   : > { %1647 = vmatpush1.bf16.msra.mxu0 %v1646_v20  ;;  %1669 = vmatprep.subr.bf16.mxu1 %v1668_v41  ;;  %v481_v50 = vld [vmem:[%s2423_s27 + $0xa8] sm:$0xff]  ;;  %v452_v52 = vld [vmem:[%s2388_s19 + $0xc0] sm:$0xff]  ;;  %v454_v53 = vld [vmem:[%s2388_s19 + $0xd0] sm:$0xff]  ;;  %v1674_v54 = vpack.c.bf16 %v463_v48, %v462_v47 }
  0x8a   : > { %1649 = vmatprep.subr.bf16.mxu0 %v1648_v21  ;;  %1671 = vmatpush3.bf16.msra.mxu1 %v1670_v45  ;;  %v457_v56 = vld [vmem:[%s2388_s19 + $0xe8] sm:$0xff]  ;;  %v1676_v57 = vpack.c.bf16 %v481_v50, %v480_v49  ;;  %v464_v58 = vld [vmem:[%s2423_s27 + $0x20] sm:$0xff]  ;;  %v459_v60 = vld [vmem:[%s2388_s19 + $0xf8] sm:$0xff]  ;;  %v1662_v63 = vpack.c.bf16 %v454_v53, %v452_v52 }
  0x8b   : > { %1673 = vmatprep.subr.bf16.mxu1 %v1672_v46  ;;  %v465_v59 = vld [vmem:[%s2423_s27 + $0x28] sm:$0xff]  ;;  %v482_v61 = vld [vmem:[%s2423_s27 + $0xb0] sm:$0xff]  ;;  %v483_v62 = vld [vmem:[%s2423_s27 + $0xb8] sm:$0xff]  ;;  %v1664_v3 = vpack.c.bf16 %v459_v60, %v457_v56 }
  0x8c   : > { %v456_v1 = vld [vmem:[%s2388_s19 + $0xe0] sm:$0xff]  ;;  %v1678_v2 = vpack.c.bf16 %v465_v59, %v464_v58  ;;  %v458_v4 = vld [vmem:[%s2388_s19 + $0xf0] sm:$0xff]  ;;  %v1680_v5 = vpack.c.bf16 %v483_v62, %v482_v61  ;;  %v467_v7 = vld [vmem:[%s2423_s27 + $0x38] sm:$0xff]  ;;  %v494_v62 = vlaneseq  ;;  %s2130_s19 = smov [#allocation8]  }
  0x8d   : > { %1651 = vmatpush1.bf16.msra.mxu0 %v1650_v26  ;;  %v466_v6 = vld [vmem:[%s2423_s27 + $0x30] sm:$0xff]  ;;  %v484_v8 = vld [vmem:[%s2423_s27 + $0xc0] sm:$0xff]  ;;  %v485_v9 = vld [vmem:[%s2423_s27 + $0xc8] sm:$0xff]  ;;  %v1666_v10 = vpack.c.bf16 %v458_v4, %v456_v1 }
  0x8e   : > { %1653 = vmatprep.subr.bf16.mxu0 %v1652_v27  ;;  %1675 = vmatpush3.bf16.msra.mxu1 %v1674_v54  ;;  %v1682_v11 = vpack.c.bf16 %v467_v7, %v466_v6  ;;  %v1684_v12 = vpack.c.bf16 %v485_v9, %v484_v8  ;;  %v468_v13 = vld [vmem:[%s2423_s27 + $0x40] sm:$0xff]  ;;  %v469_v14 = vld [vmem:[%s2423_s27 + $0x48] sm:$0xff]  ;;  %v486_v15 = vld [vmem:[%s2423_s27 + $0xd0] sm:$0xff] }
  0x8f   : > { %1677 = vmatprep.subr.bf16.mxu1 %v1676_v57  ;;  %v487_v16 = vld [vmem:[%s2423_s27 + $0xd8] sm:$0xff]  ;;  %v2454_v17 = vld [vmem:[%s2378_s15] sm:$0xff]  ;;  %v1686_v18 = vpack.c.bf16 %v469_v14, %v468_v13  ;;  %v470_v20 = vld [vmem:[%s2423_s27 + $0x50] sm:$0xff] }
  0x90   : > { %v1688_v19 = vpack.c.bf16 %v487_v16, %v486_v15  ;;  %v471_v21 = vld [vmem:[%s2423_s27 + $0x58] sm:$0xff]  ;;  %v488_v22 = vld [vmem:[%s2423_s27 + $0xe0] sm:$0xff]  ;;  %v489_v23 = vld [vmem:[%s2423_s27 + $0xe8] sm:$0xff]  ;;  %v849_v50 = vmul.f32 %v2454_v17, %v2454_v17 }
  0x91   : > { %1655 = vmatpush1.bf16.msra.mxu0 %v1654_v34  ;;  %v2463_v24 = vld [vmem:[%s2378_s15 + $0x8] sm:$0xff]  ;;  %v1690_v25 = vpack.c.bf16 %v471_v21, %v470_v20  ;;  %v1692_v26 = vpack.c.bf16 %v489_v23, %v488_v22  ;;  %v2468_v27 = vld [vmem:[%s2378_s15 + $0x10] sm:$0xff]  ;;  %v2473_v28 = vld [vmem:[%s2378_s15 + $0x18] sm:$0xff] }
  0x92   : > { %1657 = vmatprep.subr.bf16.mxu0 %v1656_v40  ;;  %1679 = vmatpush3.bf16.msra.mxu1 %v1678_v2  ;;  %v2478_v29 = vld [vmem:[%s2378_s15 + $0x20] sm:$0xff]  ;;  %v2483_v30 = vld [vmem:[%s2378_s15 + $0x28] sm:$0xff]  ;;  %v2488_v31 = vld [vmem:[%s2378_s15 + $0x30] sm:$0xff]  ;;  %v852_v52 = vmul.f32 %v2473_v28, %v2473_v28 }
  0x93   : > { %1681 = vmatprep.subr.bf16.mxu1 %v1680_v5  ;;  %v2493_v32 = vld [vmem:[%s2378_s15 + $0x38] sm:$0xff]  ;;  %v2498_v33 = vld [vmem:[%s2378_s15 + $0x40] sm:$0xff]  ;;  %v2503_v34 = vld [vmem:[%s2378_s15 + $0x48] sm:$0xff]  ;;  %865 = vadd.xlane.f32.xlu0 %v849_v50  ;;  %v853_v53 = vmul.f32 %v2478_v29, %v2478_v29  ;;  %v854_v54 = vmul.f32 %v2483_v30, %v2483_v30 }
  0x94   : > { %v2508_v35 = vld [vmem:[%s2378_s15 + $0x50] sm:$0xff]  ;;  %v2513_v36 = vld [vmem:[%s2378_s15 + $0x58] sm:$0xff]  ;;  %v2518_v37 = vld [vmem:[%s2378_s15 + $0x60] sm:$0xff]  ;;  %v856_v56 = vmul.f32 %v2493_v32, %v2493_v32  ;;  %v857_v57 = vmul.f32 %v2498_v33, %v2498_v33  ;;  %v858_v58 = vmul.f32 %v2503_v34, %v2503_v34 }
  0x95   : > { %1659 = vmatpush1.bf16.msra.mxu0 %v1658_v51  ;;  %v2523_v38 = vld [vmem:[%s2378_s15 + $0x68] sm:$0xff]  ;;  %v2528_v39 = vld [vmem:[%s2378_s15 + $0x70] sm:$0xff]  ;;  %v2533_v40 = vld [vmem:[%s2378_s15 + $0x78] sm:$0xff]  ;;  %v850_v51 = vmul.f32 %v2463_v24, %v2463_v24  ;;  %v859_v59 = vmul.f32 %v2508_v35, %v2508_v35  ;;  %v860_v60 = vmul.f32 %v2513_v36, %v2513_v36  ;;  %v861_v61 = vmul.f32 %v2518_v37, %v2518_v37  ;;  %s2851_s15 = scalar_lea.hbm %s2983_s5, %s1554_s28 }
  0x96   : > { %1661 = vmatprep.subr.bf16.mxu0 %v1660_v55  ;;  %1683 = vmatpush3.bf16.msra.mxu1 %v1682_v11  ;;  %v472_v41 = vld [vmem:[%s2423_s27 + $0x60] sm:$0xff]  ;;  %v473_v42 = vld [vmem:[%s2423_s27 + $0x68] sm:$0xff]  ;;  %v490_v44 = vld [vmem:[%s2423_s27 + $0xf0] sm:$0xff]  ;;  %v855_v55 = vmul.f32 %v2488_v31, %v2488_v31 }
  0x97   : > { %1685 = vmatprep.subr.bf16.mxu1 %v1684_v12  ;;  %v1694_v43 = vpack.c.bf16 %v473_v42, %v472_v41  ;;  %v491_v45 = vld [vmem:[%s2423_s27 + $0xf8] sm:$0xff]  ;;  %v474_v47 = vld [vmem:[%s2423_s27 + $0x70] sm:$0xff]  ;;  %867 = vadd.xlane.f32.xlu0 %v850_v51  ;;  %v492_v2 = vld [vmem:[%s406_s25] sm:$0x3] }
  0x98   : > { %v1696_v46 = vpack.c.bf16 %v491_v45, %v490_v44  ;;  %v475_v48 = vld [vmem:[%s2423_s27 + $0x78] sm:$0xff]  ;;  %s2006_s27 = sshll.u32 %s2130_s19, 4  ;;  %s2007_s27 = int_to_ptr.vmem [resolvable:$false] %s2006_s27 }
  0x99   : > { %1663 = vmatpush1.bf16.msra.mxu0 %v1662_v63  ;;  %v1698_v49 = vpack.c.bf16 %v475_v48, %v474_v47  ;;  %v495_v63 = vshrl.u32 %v494_v62, 7  ;;  %s2008_s9 = scalar_lea.vmem %s2007_s27, 4096  ;;  %p2009_p4 = scmp.lt.s32.totalorder %s2854_s23, %s2007_s27 }
  0x9a   : > { %1665 = vmatprep.subr.bf16.mxu0 %v1664_v3  ;;  %1687 = vmatpush3.bf16.msra.mxu1 %v1686_v18  ;;  %p2010_p10 = scmp.lt.s32.totalorder %s2008_s9, %s2002_s7 }
  0x9b   : > { %1689 = vmatprep.subr.bf16.mxu1 %v1688_v19  ;;  %873 = vadd.xlane.f32.xlu0 %v853_v53  ;;  %v496_v1 = vsub.s32 0, %v495_v63  ;;  %v500_v3 = vsub.s32 1, %v495_v63 }
  0x9c   : > { %p2011_p13 = por %p2010_p10, %p2009_p4 }
  0x9d   : > { %1667 = vmatpush1.bf16.msra.mxu0 %v1666_v10  ;;  %v2576_v4 = vrot.slane %v492_v2, %v496_v1  ;;  %v2578_v5 = vrot.slane %v492_v2, %v500_v3 }
  0x9e   : > { %1691 = vmatpush3.bf16.msra.mxu1 %v1690_v25  ;;  %p2012_p11 = pnand %p2011_p13, %p2005_p12 }
  0x9f   : > { %1693 = vmatprep.subr.bf16.mxu1 %v1692_v26  ;;  %877 = vadd.xlane.f32.xlu0 %v855_v55 }
  0xa0   : > { %569 = vmatmul.mubr.f32.vlgmr.msra.gmra.mrb[0].mxu0 %v2454_v17 }
  0xa1   : > { %574 = vmatprep.mubr.f32.mxu0 %v2129_v0 }
  0xa2   : > { %1695 = vmatpush3.bf16.msra.mxu1 %v1694_v43 }
  0xa3   : > { %1697 = vmatprep.subr.bf16.mxu1 %v1696_v46  ;;  %881 = vadd.xlane.f32.xlu0 %v857_v57 }
  0xa4   : > { %575 = vmatmul.mubr.f32.gmra.mrb[2].mxu0 %v2463_v24 }
  0xa5   : > { %580 = vmatprep.mubr.f32.mxu0 %v2129_v0 }
  0xa6   : > { %1699 = vmatpush3.bf16.msra.mxu1 %v1698_v49 }
  0xa7   : > { %885 = vadd.xlane.f32.xlu0 %v859_v59 }
  0xa8   : > { %581 = vmatmul.mubr.f32.gmra.mrb[4].mxu0 %v2468_v27 }
  0xa9   : > { %586 = vmatprep.mubr.f32.mxu0 %v2129_v0 }
  0xab   : > { %889 = vadd.xlane.f32.xlu0 %v861_v61 }
  0xac   : > { %587 = vmatmul.mubr.f32.gmra.mrb[6].mxu0 %v2473_v28 }
  0xad   : > { %592 = vmatprep.mubr.f32.mxu0 %v2129_v0 }
  0xb0   : > { %593 = vmatmul.mubr.f32.gmra.mrb[8].mxu0 %v2478_v29 }
  0xb1   : > { %598 = vmatprep.mubr.f32.mxu0 %v2129_v0 }
  0xb4   : > { %599 = vmatmul.mubr.f32.gmra.mrb[10].mxu0 %v2483_v30 }
  0xb5   : > { %604 = vmatprep.mubr.f32.mxu0 %v2129_v0 }
  0xb8   : > { %605 = vmatmul.mubr.f32.gmra.mrb[12].mxu0 %v2488_v31 }
  0xb9   : > { %610 = vmatprep.mubr.f32.mxu0 %v2129_v0 }
  0xbc   : > { %611 = vmatmul.mubr.f32.gmra.mrb[14].mxu0 %v2493_v32 }
  0xbd   : > { %616 = vmatprep.mubr.f32.mxu0 %v2129_v0 }
  0xc0   : > { %617 = vmatmul.mubr.f32.gmra.mrb[16].mxu0 %v2498_v33 }
  0xc1   : > { %622 = vmatprep.mubr.f32.mxu0 %v2129_v0 }
  0xc4   : > { %623 = vmatmul.mubr.f32.gmra.mrb[18].mxu0 %v2503_v34 }
  0xc5   : > { %628 = vmatprep.mubr.f32.mxu0 %v2129_v0 }
  0xc8   : > { %629 = vmatmul.mubr.f32.gmra.mrb[20].mxu0 %v2508_v35 }
  0xc9   : > { %634 = vmatprep.mubr.f32.mxu0 %v2129_v0 }
  0xcc   : > { %635 = vmatmul.mubr.f32.gmra.mrb[22].mxu0 %v2513_v36 }
  0xcd   : > { %640 = vmatprep.mubr.f32.mxu0 %v2129_v0 }
  0xd0   : > { %641 = vmatmul.mubr.f32.gmra.mrb[24].mxu0 %v2518_v37 }
  0xd1   : > { %646 = vmatprep.mubr.f32.mxu0 %v2129_v0 }
  0xd4   : > { %647 = vmatmul.mubr.f32.gmra.mrb[26].mxu0 %v2523_v38 }
  0xd5   : > { %652 = vmatprep.mubr.f32.mxu0 %v2129_v0 }
  0xd8   : > { %653 = vmatmul.mubr.f32.gmra.mrb[28].mxu0 %v2528_v39 }
  0xd9   : > { %658 = vmatprep.mubr.f32.mxu0 %v2129_v0  ;;  %v851_v0 = vmul.f32 %v2468_v27, %v2468_v27 }
  0xdb   : > { %869 = vadd.xlane.f32.xlu1 %v851_v0 }
  0xdc   : > { %659 = vmatmul.mubr.f32.gmra.mrb[30].mxu0 %v2533_v40 }
  0xdf   : > { %871 = vadd.xlane.f32.xlu1 %v852_v52 }
  0xe3   : > { %875 = vadd.xlane.f32.xlu1 %v854_v54 }
  0xe7   : > { %879 = vadd.xlane.f32.xlu1 %v856_v56 }
  0xeb   : > { %883 = vadd.xlane.f32.xlu1 %v858_v58 }
  0xef   : > { %887 = vadd.xlane.f32.xlu1 %v860_v60 }
 0x173   : > { %v570_v6 = vpop.f32.mrb[0].mxu0 }
 0x174   : > { %v571_v7 = vadd.f32 %v570_v6, %v2576_v4  ;;  %v572_v8 = vpop.f32.mrb[1].mxu0 }
 0x175   : > { %v573_v9 = vadd.f32 %v572_v8, %v2578_v5 }
 0x176   : > { %v665_v12 = vmax.f32 %v571_v7, 0.0 }
 0x177   : > { %v576_v10 = vpop.f32.mrb[2].mxu0  ;;  %v666_v11 = vmax.f32 %v573_v9, 0.0 }
 0x178   : > { %v577_v13 = vadd.f32 %v576_v10, %v2576_v4  ;;  %v578_v14 = vpop.f32.mrb[3].mxu0 }
 0x179   : > { %v579_v15 = vadd.f32 %v578_v14, %v2578_v5  ;;  %768 = vmatprep.mubr.f32.mxu1 %v666_v11 }
 0x17a   : > { %769 = vmatmul.mubr.f32.vlgmr.msra.gmra.mrb[0].mxu1 %v665_v12  ;;  %v667_v19 = vmax.f32 %v577_v13, 0.0 }
 0x17b   : > { %v668_v16 = vmax.f32 %v579_v15, 0.0  ;;  %v582_v18 = vpop.f32.mrb[4].mxu0 }
 0x17c   : > { %v583_v20 = vadd.f32 %v582_v18, %v2576_v4  ;;  %v584_v21 = vpop.f32.mrb[5].mxu0 }
 0x17d   : > { %v585_v22 = vadd.f32 %v584_v21, %v2578_v5  ;;  %773 = vmatprep.mubr.f32.mxu1 %v668_v16 }
 0x17e   : > { %774 = vmatmul.mubr.f32.gmra.mrb[2].mxu1 %v667_v19  ;;  %v669_v26 = vmax.f32 %v583_v20, 0.0 }
 0x17f   : > { %v670_v23 = vmax.f32 %v585_v22, 0.0  ;;  %v588_v25 = vpop.f32.mrb[6].mxu0 }
 0x180   : > { %v589_v41 = vadd.f32 %v588_v25, %v2576_v4  ;;  %v590_v42 = vpop.f32.mrb[7].mxu0 }
 0x181   : > { %v591_v43 = vadd.f32 %v590_v42, %v2578_v5  ;;  %778 = vmatprep.mubr.f32.mxu1 %v670_v23 }
 0x182   : > { %779 = vmatmul.mubr.f32.gmra.mrb[4].mxu1 %v669_v26  ;;  %v671_v46 = vmax.f32 %v589_v41, 0.0 }
 0x183   : > { %v672_v44 = vmax.f32 %v591_v43, 0.0  ;;  %v594_v45 = vpop.f32.mrb[8].mxu0 }
 0x184   : > { %v595_v47 = vadd.f32 %v594_v45, %v2576_v4  ;;  %v596_v48 = vpop.f32.mrb[9].mxu0 }
 0x185   : > { %v597_v49 = vadd.f32 %v596_v48, %v2578_v5  ;;  %783 = vmatprep.mubr.f32.mxu1 %v672_v44 }
 0x186   : > { %784 = vmatmul.mubr.f32.gmra.mrb[6].mxu1 %v671_v46  ;;  %v673_v51 = vmax.f32 %v595_v47, 0.0 }
 0x187   : > { %v674_v50 = vmax.f32 %v597_v49, 0.0  ;;  %v600_v0 = vpop.f32.mrb[10].mxu0 }
 0x188   : > { %v601_v52 = vadd.f32 %v600_v0, %v2576_v4  ;;  %v602_v53 = vpop.f32.mrb[11].mxu0 }
 0x189   : > { %v603_v54 = vadd.f32 %v602_v53, %v2578_v5  ;;  %788 = vmatprep.mubr.f32.mxu1 %v674_v50 }
 0x18a   : > { %789 = vmatmul.mubr.f32.gmra.mrb[8].mxu1 %v673_v51  ;;  %v675_v57 = vmax.f32 %v601_v52, 0.0 }
 0x18b   : > { %v676_v55 = vmax.f32 %v603_v54, 0.0  ;;  %v606_v56 = vpop.f32.mrb[12].mxu0 }
 0x18c   : > { %v607_v58 = vadd.f32 %v606_v56, %v2576_v4  ;;  %v608_v59 = vpop.f32.mrb[13].mxu0 }
 0x18d   : > { %v609_v60 = vadd.f32 %v608_v59, %v2578_v5  ;;  %793 = vmatprep.mubr.f32.mxu1 %v676_v55 }
 0x18e   : > { %794 = vmatmul.mubr.f32.gmra.mrb[10].mxu1 %v675_v57  ;;  %v677_v63 = vmax.f32 %v607_v58, 0.0 }
 0x18f   : > { %v678_v61 = vmax.f32 %v609_v60, 0.0  ;;  %v612_v62 = vpop.f32.mrb[14].mxu0 }
 0x190   : > { %v613_v1 = vadd.f32 %v612_v62, %v2576_v4  ;;  %v614_v2 = vpop.f32.mrb[15].mxu0 }
 0x191   : > { %v615_v3 = vadd.f32 %v614_v2, %v2578_v5  ;;  %798 = vmatprep.mubr.f32.mxu1 %v678_v61 }
 0x192   : > { %799 = vmatmul.mubr.f32.gmra.mrb[12].mxu1 %v677_v63  ;;  %v679_v8 = vmax.f32 %v613_v1, 0.0 }
 0x193   : > { %v680_v6 = vmax.f32 %v615_v3, 0.0  ;;  %v618_v7 = vpop.f32.mrb[16].mxu0 }
 0x194   : > { %v619_v9 = vadd.f32 %v618_v7, %v2576_v4  ;;  %v620_v10 = vpop.f32.mrb[17].mxu0 }
 0x195   : > { %v621_v11 = vadd.f32 %v620_v10, %v2578_v5  ;;  %803 = vmatprep.mubr.f32.mxu1 %v680_v6  ;;  %v862_v10 = vmul.f32 %v2523_v38, %v2523_v38 }
 0x196   : > { %804 = vmatmul.mubr.f32.gmra.mrb[14].mxu1 %v679_v8  ;;  %v681_v14 = vmax.f32 %v619_v9, 0.0 }
 0x197   : > { %v682_v12 = vmax.f32 %v621_v11, 0.0  ;;  %v624_v13 = vpop.f32.mrb[18].mxu0  ;;  %v863_v11 = vmul.f32 %v2528_v39, %v2528_v39  ;;  %891 = vadd.xlane.f32.xlu1 %v862_v10 }
 0x198   : > { %v625_v15 = vadd.f32 %v624_v13, %v2576_v4  ;;  %v626_v16 = vpop.f32.mrb[19].mxu0 }
 0x199   : > { %v627_v18 = vadd.f32 %v626_v16, %v2578_v5  ;;  %808 = vmatprep.mubr.f32.mxu1 %v682_v12  ;;  %893 = vadd.xlane.f32.xlu0 %v863_v11  ;;  %v866_v12 = vpop.xlane.xlu0 %865 }
 0x19a   : > { %809 = vmatmul.mubr.f32.gmra.mrb[16].mxu1 %v681_v14  ;;  %v683_v21 = vmax.f32 %v625_v15, 0.0  ;;  %1784 = vrsqrt.f32 %v866_v12  ;;  %vm899_vm0 = vcmp.eq.f32.partialorder %v866_v12, inf  ;;  %vm901_vm1 = vcmp.eq.f32.partialorder %v866_v12, 0.0 }
 0x19b   : > { %v684_v19 = vmax.f32 %v627_v18, 0.0  ;;  %v630_v20 = vpop.f32.mrb[20].mxu0 }
 0x19c   : > { %v631_v22 = vadd.f32 %v630_v20, %v2576_v4  ;;  %v632_v23 = vpop.f32.mrb[21].mxu0 }
 0x19d   : > { %v633_v25 = vadd.f32 %v632_v23, %v2578_v5  ;;  %813 = vmatprep.mubr.f32.mxu1 %v684_v19  ;;  %v868_v13 = vpop.xlane.xlu0 %867  ;;  %v902_v19 = vand.u32 2147483648, %v866_v12 }
 0x19e   : > { %814 = vmatmul.mubr.f32.gmra.mrb[18].mxu1 %v683_v21  ;;  %v685_v42 = vmax.f32 %v631_v22, 0.0  ;;  %vm906_vm4 = vcmp.eq.f32.partialorder %v868_v13, inf  ;;  %vm908_vm5 = vcmp.eq.f32.partialorder %v868_v13, 0.0 }
 0x19f   : > { %v686_v26 = vmax.f32 %v633_v25, 0.0  ;;  %v636_v41 = vpop.f32.mrb[22].mxu0 }
 0x1a0   : > { %v637_v43 = vadd.f32 %v636_v41, %v2576_v4  ;;  %v638_v44 = vpop.f32.mrb[23].mxu0  ;;  %v909_v41 = vand.u32 2147483648, %v868_v13 }
 0x1a1   : > { %v639_v45 = vadd.f32 %v638_v44, %v2578_v5  ;;  %818 = vmatprep.mubr.f32.mxu1 %v686_v26  ;;  %v2618_v15 = vpop.xlane.xlu0 %873 }
 0x1a2   : > { %819 = vmatmul.mubr.f32.gmra.mrb[20].mxu1 %v685_v42  ;;  %v687_v48 = vmax.f32 %v637_v43, 0.0  ;;  %vm927_vm8 = vcmp.eq.f32.partialorder %v2618_v15, inf  ;;  %vm929_vm9 = vcmp.eq.f32.partialorder %v2618_v15, 0.0 }
 0x1a3   : > { %v688_v46 = vmax.f32 %v639_v45, 0.0  ;;  %v642_v47 = vpop.f32.mrb[24].mxu0 }
 0x1a4   : > { %v643_v49 = vadd.f32 %v642_v47, %v2576_v4  ;;  %v644_v50 = vpop.f32.mrb[25].mxu0  ;;  %v1785_v18 = vpop.eup %1784 }
 0x1a5   : > { %v645_v0 = vadd.f32 %v644_v50, %v2578_v5  ;;  %823 = vmatprep.mubr.f32.mxu1 %v688_v46  ;;  %v898_v21 = vmul.f32 %v1785_v18, %v866_v12  ;;  %v2624_v23 = vpop.xlane.xlu0 %877 }
 0x1a6   : > { %824 = vmatmul.mubr.f32.gmra.mrb[22].mxu1 %v687_v48  ;;  %v689_v53 = vmax.f32 %v643_v49, 0.0  ;;  %vm941_vm12 = vcmp.eq.f32.partialorder %v2624_v23, inf  ;;  %vm943_vm13 = vcmp.eq.f32.partialorder %v2624_v23, 0.0 }
 0x1a7   : > { %v690_v51 = vmax.f32 %v645_v0, 0.0  ;;  %v648_v52 = vpop.f32.mrb[26].mxu0  ;;  %v900_v42 = vsel %vm899_vm0, %v866_v12, %v898_v21 }
 0x1a8   : > { %v649_v54 = vadd.f32 %v648_v52, %v2576_v4  ;;  %v650_v55 = vpop.f32.mrb[27].mxu0  ;;  %v903_v44 = vsel %vm901_vm1, %v902_v19, %v900_v42 }
 0x1a9   : > { %v651_v56 = vadd.f32 %v650_v55, %v2578_v5  ;;  %828 = vmatprep.mubr.f32.mxu1 %v690_v51  ;;  %v1009_v48 = vadd.f32 1e-07, %v903_v44  ;;  %v2635_v0 = vpop.xlane.xlu0 %881 }
 0x1aa   : > { %829 = vmatmul.mubr.f32.gmra.mrb[24].mxu1 %v689_v53  ;;  %v691_v59 = vmax.f32 %v649_v54, 0.0  ;;  %v930_v53 = vand.u32 2147483648, %v2618_v15  ;;  %vm955_vm0 = vcmp.eq.f32.partialorder %v2635_v0, inf  ;;  %vm957_vm1 = vcmp.eq.f32.partialorder %v2635_v0, 0.0 }
 0x1ab   : > { %v692_v57 = vmax.f32 %v651_v56, 0.0  ;;  %v654_v58 = vpop.f32.mrb[28].mxu0 }
 0x1ac   : > { %v655_v60 = vadd.f32 %v654_v58, %v2576_v4  ;;  %v656_v61 = vpop.f32.mrb[29].mxu0 }
 0x1ad   : > { %v657_v62 = vadd.f32 %v656_v61, %v2578_v5  ;;  %833 = vmatprep.mubr.f32.mxu1 %v692_v57 }
 0x1ae   : > { %834 = vmatmul.mubr.f32.gmra.mrb[26].mxu1 %v691_v59  ;;  %v693_v2 = vmax.f32 %v655_v60, 0.0 }
 0x1af   : > { %v694_v63 = vmax.f32 %v657_v62, 0.0  ;;  %v660_v1 = vpop.f32.mrb[30].mxu0 }
 0x1b0   : > { %v661_v3 = vadd.f32 %v660_v1, %v2576_v4  ;;  %v662_v6 = vpop.f32.mrb[31].mxu0  ;;  %v864_v4 = vmul.f32 %v2533_v40, %v2533_v40 }
 0x1b1   : > { %v663_v7 = vadd.f32 %v662_v6, %v2578_v5  ;;  %838 = vmatprep.mubr.f32.mxu1 %v694_v63  ;;  %v870_v5 = vpop.xlane.xlu1 %869 }
 0x1b2   : > { %839 = vmatmul.mubr.f32.gmra.mrb[28].mxu1 %v693_v2  ;;  %v695_v9 = vmax.f32 %v661_v3, 0.0  ;;  %895 = vadd.xlane.f32.xlu1 %v864_v4  ;;  %1786 = vrsqrt.f32 %v870_v5  ;;  %vm913_vm2 = vcmp.eq.f32.partialorder %v870_v5, inf  ;;  %vm915_vm3 = vcmp.eq.f32.partialorder %v870_v5, 0.0  ;;  %v2653_v3 = vpop.xlane.xlu0 %885 }
 0x1b3   : > { %v696_v8 = vmax.f32 %v663_v7, 0.0  ;;  %1788 = vrsqrt.f32 %v868_v13  ;;  %v916_v22 = vand.u32 2147483648, %v870_v5  ;;  %v944_v7 = vand.u32 2147483648, %v2624_v23 }
 0x1b5   : > { %843 = vmatprep.mubr.f32.mxu1 %v696_v8  ;;  %v872_v14 = vpop.xlane.xlu1 %871 }
 0x1b6   : > { %844 = vmatmul.mubr.f32.gmra.mrb[30].mxu1 %v695_v9  ;;  %1790 = vrsqrt.f32 %v872_v14  ;;  %vm920_vm6 = vcmp.eq.f32.partialorder %v872_v14, inf  ;;  %vm922_vm7 = vcmp.eq.f32.partialorder %v872_v14, 0.0  ;;  %v923_v46 = vand.u32 2147483648, %v872_v14 }
 0x1b7   : > { %1792 = vrsqrt.f32 %v2618_v15 }
 0x1b9   : > { %v2620_v16 = vpop.xlane.xlu1 %875 }
 0x1ba   : > { %1794 = vrsqrt.f32 %v2620_v16  ;;  %vm934_vm10 = vcmp.eq.f32.partialorder %v2620_v16, inf  ;;  %vm936_vm11 = vcmp.eq.f32.partialorder %v2620_v16, 0.0  ;;  %v937_v59 = vand.u32 2147483648, %v2620_v16 }
 0x1bb   : > { %1796 = vrsqrt.f32 %v2624_v23 }
 0x1bc   : > { %v1787_v20 = vpop.eup %1786 }
 0x1bd   : > { %v2626_v25 = vpop.xlane.xlu1 %879  ;;  %v912_v26 = vmul.f32 %v1787_v20, %v870_v5  ;;  %v1789_v43 = vpop.eup %1788 }
 0x1be   : > { %1798 = vrsqrt.f32 %v2626_v25  ;;  %v905_v50 = vmul.f32 %v1789_v43, %v868_v13  ;;  %vm948_vm14 = vcmp.eq.f32.partialorder %v2626_v25, inf  ;;  %v951_v11 = vand.u32 2147483648, %v2626_v25 }
 0x1bf   : > { %v914_v45 = vsel %vm913_vm2, %v870_v5, %v912_v26  ;;  %1800 = vrsqrt.f32 %v2635_v0  ;;  %vm950_vm15 = vcmp.eq.f32.partialorder %v2626_v25, 0.0  ;;  %v2686_v26 = vpop.xlane.xlu0 %889 }
 0x1c0   : > { %v1791_v47 = vpop.eup %1790  ;;  %v917_v49 = vsel %vm915_vm3, %v916_v22, %v914_v45  ;;  %1802 = vrcp.f32 %v1009_v48  ;;  %v907_v54 = vsel %vm906_vm4, %v868_v13, %v905_v50  ;;  %v958_v22 = vand.u32 2147483648, %v2635_v0 }
 0x1c1   : > { %v1011_v51 = vadd.f32 1e-07, %v917_v49  ;;  %v919_v52 = vmul.f32 %v1791_v47, %v872_v14  ;;  %v2642_v55 = vpop.xlane.xlu1 %883  ;;  %v1793_v56 = vpop.eup %1792  ;;  %v910_v57 = vsel %vm908_vm5, %v909_v41, %v907_v54  ;;  %vm969_vm4 = vcmp.eq.f32.partialorder %v2653_v3, inf }
 0x1c2   : > { %v1010_v61 = vadd.f32 1e-07, %v910_v57  ;;  %v926_v63 = vmul.f32 %v1793_v56, %v2618_v15  ;;  %vm962_vm2 = vcmp.eq.f32.partialorder %v2642_v55, inf  ;;  %v965_v49 = vand.u32 2147483648, %v2642_v55 }
 0x1c3   : > { %1804 = vrcp.f32 %v1011_v51  ;;  %v921_v58 = vsel %vm920_vm6, %v872_v14, %v919_v52  ;;  %vm964_vm3 = vcmp.eq.f32.partialorder %v2642_v55, 0.0  ;;  %vm971_vm5 = vcmp.eq.f32.partialorder %v2653_v3, 0.0 }
 0x1c4   : > { %v1795_v60 = vpop.eup %1794  ;;  %v924_v62 = vsel %vm922_vm7, %v923_v46, %v921_v58  ;;  %1806 = vrsqrt.f32 %v2642_v55  ;;  %v928_v6 = vsel %vm927_vm8, %v2618_v15, %v926_v63  ;;  %v972_v58 = vand.u32 2147483648, %v2653_v3 }
 0x1c5   : > { %v1012_v1 = vadd.f32 1e-07, %v924_v62  ;;  %v933_v2 = vmul.f32 %v1795_v60, %v2620_v16  ;;  %1808 = vrcp.f32 %v1010_v61  ;;  %v1797_v8 = vpop.eup %1796  ;;  %v931_v9 = vsel %vm929_vm9, %v930_v53, %v928_v6  ;;  %v2670_v14 = vpop.xlane.xlu1 %887 }
 0x1c6   : > { %v1013_v12 = vadd.f32 1e-07, %v931_v9  ;;  %v940_v13 = vmul.f32 %v1797_v8, %v2624_v23  ;;  %vm976_vm6 = vcmp.eq.f32.partialorder %v2670_v14, inf  ;;  %vm978_vm7 = vcmp.eq.f32.partialorder %v2670_v14, 0.0 }
 0x1c7   : > { %1810 = vrcp.f32 %v1012_v1  ;;  %v935_v10 = vsel %vm934_vm10, %v2620_v16, %v933_v2  ;;  %vm983_vm8 = vcmp.eq.f32.partialorder %v2686_v26, inf  ;;  %v986_v9 = vand.u32 2147483648, %v2686_v26 }
 0x1c8   : > { %v1799_v4 = vpop.eup %1798  ;;  %v938_v5 = vsel %vm936_vm11, %v937_v59, %v935_v10  ;;  %1812 = vrsqrt.f32 %v2653_v3  ;;  %v942_v19 = vsel %vm941_vm12, %v2624_v23, %v940_v13  ;;  %vm985_vm9 = vcmp.eq.f32.partialorder %v2686_v26, 0.0 }
 0x1c9   : > { %v1014_v18 = vadd.f32 1e-07, %v938_v5  ;;  %v947_v15 = vmul.f32 %v1799_v4, %v2626_v25  ;;  %1814 = vrsqrt.f32 %v2670_v14  ;;  %v1801_v16 = vpop.eup %1800  ;;  %v945_v20 = vsel %vm943_vm13, %v944_v7, %v942_v19 }
 0x1ca   : > { %1816 = vrcp.f32 %v1013_v12  ;;  %v1803_v41 = vpop.eup %1802  ;;  %v1015_v42 = vadd.f32 1e-07, %v945_v20  ;;  %v954_v44 = vmul.f32 %v1801_v16, %v2635_v0 }
 0x1cb   : > { %1818 = vrcp.f32 %v1014_v18  ;;  %v949_v21 = vsel %vm948_vm14, %v2626_v25, %v947_v15  ;;  %v1233_v23 = vmul.f32 %v1803_v41, %v2454_v17 }
 0x1cc   : > { %v952_v43 = vsel %vm950_vm15, %v951_v11, %v949_v21  ;;  %1820 = vrsqrt.f32 %v2686_v26  ;;  %v956_v48 = vsel %vm955_vm0, %v2635_v0, %v954_v44 }
 0x1cd   : > { %v1805_v45 = vpop.eup %1804  ;;  %v1016_v46 = vadd.f32 1e-07, %v952_v43  ;;  %1822 = vrcp.f32 %v1015_v42  ;;  %1249 = vst [vmem:[%s2698_s1] sm:$0xff] %v1233_v23  ;;  %v959_v17 = vsel %vm957_vm1, %v958_v22, %v956_v48  ;;  %v2756_v42 = vld [vmem:[%s409_s8] ss:$0 sm:$0xff] }
 0x1ce   : > { %v1807_v47 = vpop.eup %1806  ;;  %v1235_v25 = vmul.f32 %v1805_v45, %v2468_v27  ;;  %v1017_v51 = vadd.f32 1e-07, %v959_v17 }
 0x1cf   : > { %1824 = vrcp.f32 %v1016_v46  ;;  %v961_v50 = vmul.f32 %v1807_v47, %v2642_v55  ;;  %v1809_v27 = vpop.eup %1808 }
 0x1d0   : > { %1251 = vst [vmem:[%s2698_s1 + $0x10] sm:$0xff] %v1235_v25  ;;  %v1234_v53 = vmul.f32 %v1809_v27, %v2463_v24  ;;  %1826 = vrcp.f32 %v1017_v51 }
 0x1d1   : > { %v1811_v52 = vpop.eup %1810  ;;  %v963_v54 = vsel %vm962_vm2, %v2642_v55, %v961_v50  ;;  %v979_v55 = vand.u32 2147483648, %v2670_v14 }
 0x1d2   : > { %v1813_v0 = vpop.eup %1812  ;;  %v1236_v56 = vmul.f32 %v1811_v52, %v2473_v28  ;;  %v966_v57 = vsel %vm964_vm3, %v965_v49, %v963_v54  ;;  %1250 = vst [vmem:[%s2698_s1 + $0x8] sm:$0xff] %v1234_v53 }
 0x1d3   : > { %v1815_v59 = vpop.eup %1814  ;;  %v1018_v60 = vadd.f32 1e-07, %v966_v57  ;;  %v968_v24 = vmul.f32 %v1813_v0, %v2653_v3 }
 0x1d4   : > { %v1817_v61 = vpop.eup %1816  ;;  %1252 = vst [vmem:[%s2698_s1 + $0x18] sm:$0xff] %v1236_v56  ;;  %v975_v62 = vmul.f32 %v1815_v59, %v2670_v14 }
 0x1d5   : > { %v1819_v28 = vpop.eup %1818  ;;  %v1237_v63 = vmul.f32 %v1817_v61, %v2478_v29  ;;  %1828 = vrcp.f32 %v1018_v60  ;;  %v970_v1 = vsel %vm969_vm4, %v2653_v3, %v968_v24 }
 0x1d6   : > { %v1821_v2 = vpop.eup %1820  ;;  %v1238_v6 = vmul.f32 %v1819_v28, %v2483_v30  ;;  %v973_v7 = vsel %vm971_vm5, %v972_v58, %v970_v1  ;;  %v977_v8 = vsel %vm976_vm6, %v2670_v14, %v975_v62 }
 0x1d7   : > { %1253 = vst [vmem:[%s2698_s1 + $0x20] sm:$0xff] %v1237_v63  ;;  %v1019_v29 = vadd.f32 1e-07, %v973_v7  ;;  %v980_v10 = vsel %vm978_vm7, %v979_v55, %v977_v8  ;;  %v982_v11 = vmul.f32 %v1821_v2, %v2686_v26  ;;  %v1823_v4 = vpop.eup %1822 }
 0x1d8   : > { %1254 = vst [vmem:[%s2698_s1 + $0x28] sm:$0xff] %v1238_v6  ;;  %v1020_v30 = vadd.f32 1e-07, %v980_v10  ;;  %v1239_v3 = vmul.f32 %v1823_v4, %v2488_v31 }
 0x1d9   : > { %v1825_v12 = vpop.eup %1824  ;;  %1830 = vrcp.f32 %v1019_v29  ;;  %v984_v5 = vsel %vm983_vm8, %v2686_v26, %v982_v11 }
 0x1da   : > { %v1240_v13 = vmul.f32 %v1825_v12, %v2493_v32  ;;  %1832 = vrcp.f32 %v1020_v30  ;;  %v987_v14 = vsel %vm985_vm9, %v986_v9, %v984_v5  ;;  %1255 = vst [vmem:[%s2698_s1 + $0x30] sm:$0xff] %v1239_v3  ;;  %v1827_v15 = vpop.eup %1826 }
 0x1db   : > { %v1021_v18 = vadd.f32 1e-07, %v987_v14  ;;  %v1241_v19 = vmul.f32 %v1827_v15, %v2498_v33 }
 0x1dc   : > { %1256 = vst [vmem:[%s2698_s1 + $0x38] sm:$0xff] %v1240_v13 }
 0x1dd   : > { %1834 = vrcp.f32 %v1021_v18  ;;  %1257 = vst [vmem:[%s2698_s1 + $0x40] sm:$0xff] %v1241_v19 }
 0x1df   : > { %v1829_v31 = vpop.eup %1828 }
 0x1e0   : > { %v1242_v16 = vmul.f32 %v1829_v31, %v2503_v34 }
 0x1e2   : > { %1258 = vst [vmem:[%s2698_s1 + $0x48] sm:$0xff] %v1242_v16 }
 0x1e3   : > { %v1831_v20 = vpop.eup %1830 }
 0x1e4   : > { %v1833_v32 = vpop.eup %1832  ;;  %v1243_v21 = vmul.f32 %v1831_v20, %v2508_v35 }
 0x1e5   : > { %v1244_v22 = vmul.f32 %v1833_v32, %v2513_v36 }
 0x1e6   : > { %1259 = vst [vmem:[%s2698_s1 + $0x50] sm:$0xff] %v1243_v21 }
 0x1e7   : > { %v1835_v26 = vpop.eup %1834  ;;  %1260 = vst [vmem:[%s2698_s1 + $0x58] sm:$0xff] %v1244_v22 }
 0x1e8   : > { %v1245_v41 = vmul.f32 %v1835_v26, %v2518_v37 }
 0x1ea   : > { %1261 = vst [vmem:[%s2698_s1 + $0x60] sm:$0xff] %v1245_v41 }
 0x224   : > { %v892_v0 = vpop.xlane.xlu1 %891 }
 0x225   : > { %1836 = vrsqrt.f32 %v892_v0  ;;  %vm990_vm10 = vcmp.eq.f32.partialorder %v892_v0, inf  ;;  %v993_v29 = vand.u32 2147483648, %v892_v0  ;;  %vm992_vm11 = vcmp.eq.f32.partialorder %v892_v0, 0.0 }
 0x226   : > { %v894_v58 = vpop.xlane.xlu0 %893 }
 0x227   : > { %1838 = vrsqrt.f32 %v894_v58  ;;  %vm997_vm12 = vcmp.eq.f32.partialorder %v894_v58, inf  ;;  %v1000_v30 = vand.u32 2147483648, %v894_v58  ;;  %vm999_vm13 = vcmp.eq.f32.partialorder %v894_v58, 0.0 }
 0x22f   : > { %v1837_v7 = vpop.eup %1836 }
 0x230   : > { %v989_v4 = vmul.f32 %v1837_v7, %v892_v0 }
 0x231   : > { %v1839_v10 = vpop.eup %1838 }
 0x232   : > { %v996_v5 = vmul.f32 %v1839_v10, %v894_v58  ;;  %v991_v13 = vsel %vm990_vm10, %v892_v0, %v989_v4 }
 0x233   : > { %v994_v19 = vsel %vm992_vm11, %v993_v29, %v991_v13 }
 0x234   : > { %v998_v31 = vsel %vm997_vm12, %v894_v58, %v996_v5  ;;  %v1022_v32 = vadd.f32 1e-07, %v994_v19 }
 0x235   : > { %v1001_v21 = vsel %vm999_vm13, %v1000_v30, %v998_v31 }
 0x23f   : > { %v896_v55 = vpop.xlane.xlu1 %895 }
 0x240   : > { %1840 = vrsqrt.f32 %v896_v55  ;;  %vm1004_vm14 = vcmp.eq.f32.partialorder %v896_v55, inf  ;;  %v1007_v16 = vand.u32 2147483648, %v896_v55  ;;  %vm1006_vm15 = vcmp.eq.f32.partialorder %v896_v55, 0.0 }
 0x241   : > { %1842 = vrcp.f32 %v1022_v32 }
 0x24a   : > { %v1841_v14 = vpop.eup %1840 }
 0x24b   : > { %v1003_v22 = vmul.f32 %v1841_v14, %v896_v55 }
 0x24d   : > { %v1588_v33 = vpop.f32.mrb[0].mxu1 }
 0x24e   : > { %v1589_v34 = vpop.f32.mrb[1].mxu1 }
 0x24f   : > { %v1590_v43 = vadd.f32 %v1589_v34, %v1588_v33  ;;  %v1023_v33 = vadd.f32 1e-07, %v1001_v21  ;;  %v1005_v34 = vsel %vm1004_vm14, %v896_v55, %v1003_v22 }
 0x251   : > { %v2759_v44 = vadd.f32 %v1590_v43, %v2756_v42  ;;  %v1591_v35 = vpop.f32.mrb[2].mxu1  ;;  %1844 = vrcp.f32 %v1023_v33 }
 0x252   : > { %v1592_v36 = vpop.f32.mrb[3].mxu1 }
 0x253   : > { %v1593_v45 = vadd.f32 %v1592_v36, %v1591_v35  ;;  %v1041_v23 = vmul.f32 %v2759_v44, %v2759_v44  ;;  %v1008_v36 = vsel %vm1006_vm15, %v1007_v16, %v1005_v34 }
 0x255   : > { %v2764_v37 = vadd.f32 %v1593_v45, %v2756_v42  ;;  %v1594_v46 = vpop.f32.mrb[4].mxu1  ;;  %1057 = vadd.xlane.f32.xlu0 %v1041_v23  ;;  %v1024_v23 = vadd.f32 1e-07, %v1008_v36 }
 0x256   : > { %v1595_v47 = vpop.f32.mrb[5].mxu1 }
 0x257   : > { %v1596_v25 = vadd.f32 %v1595_v47, %v1594_v46  ;;  %v1042_v48 = vmul.f32 %v2764_v37, %v2764_v37  ;;  %1846 = vrcp.f32 %v1024_v23 }
 0x259   : > { %v2769_v49 = vadd.f32 %v1596_v25, %v2756_v42  ;;  %v1597_v17 = vpop.f32.mrb[6].mxu1  ;;  %1059 = vadd.xlane.f32.xlu1 %v1042_v48 }
 0x25a   : > { %v1598_v50 = vpop.f32.mrb[7].mxu1 }
 0x25b   : > { %v1599_v27 = vadd.f32 %v1598_v50, %v1597_v17  ;;  %v1043_v51 = vmul.f32 %v2769_v49, %v2769_v49 }
 0x25d   : > { %v2774_v52 = vadd.f32 %v1599_v27, %v2756_v42  ;;  %v1600_v53 = vpop.f32.mrb[8].mxu1  ;;  %1061 = vadd.xlane.f32.xlu0 %v1043_v51 }
 0x25e   : > { %v1601_v54 = vpop.f32.mrb[9].mxu1 }
 0x25f   : > { %v1602_v56 = vadd.f32 %v1601_v54, %v1600_v53  ;;  %v1044_v57 = vmul.f32 %v2774_v52, %v2774_v52  ;;  %v1843_v54 = vpop.eup %1842 }
 0x261   : > { %v2779_v59 = vadd.f32 %v1602_v56, %v2756_v42  ;;  %v1603_v60 = vpop.f32.mrb[10].mxu1  ;;  %1063 = vadd.xlane.f32.xlu1 %v1044_v57  ;;  %v1845_v56 = vpop.eup %1844 }
 0x262   : > { %v1604_v24 = vpop.f32.mrb[11].mxu1 }
 0x263   : > { %v1605_v61 = vadd.f32 %v1604_v24, %v1603_v60  ;;  %v1045_v62 = vmul.f32 %v2779_v59, %v2779_v59  ;;  %v1246_v60 = vmul.f32 %v1843_v54, %v2523_v38  ;;  %v1247_v24 = vmul.f32 %v1845_v56, %v2528_v39 }
 0x265   : > { %v2784_v28 = vadd.f32 %v1605_v61, %v2756_v42  ;;  %v1606_v63 = vpop.f32.mrb[12].mxu1  ;;  %1065 = vadd.xlane.f32.xlu0 %v1045_v62  ;;  %1262 = vst [vmem:[%s2698_s1 + $0x68] sm:$0xff] %v1246_v60  ;;  %v1847_v62 = vpop.eup %1846  ;;  %1263 = vst [vmem:[%s2698_s1 + $0x70] sm:$0xff] %v1247_v24 }
 0x266   : > { %v1607_v1 = vpop.f32.mrb[13].mxu1 }
 0x267   : > { %v1608_v2 = vadd.f32 %v1607_v1, %v1606_v63  ;;  %v1046_v6 = vmul.f32 %v2784_v28, %v2784_v28 }
 0x269   : > { %v2789_v8 = vadd.f32 %v1608_v2, %v2756_v42  ;;  %v1609_v9 = vpop.f32.mrb[14].mxu1  ;;  %1067 = vadd.xlane.f32.xlu1 %v1046_v6  ;;  %v1248_v6 = vmul.f32 %v1847_v62, %v2533_v40 }
 0x26a   : > { %v1610_v11 = vpop.f32.mrb[15].mxu1 }
 0x26b   : > { %v1611_v12 = vadd.f32 %v1610_v11, %v1609_v9  ;;  %v1047_v3 = vmul.f32 %v2789_v8, %v2789_v8  ;;  %1264 = vst [vmem:[%s2698_s1 + $0x78] sm:$0xff] %v1248_v6 }
 0x26d   : > { %v2794_v18 = vadd.f32 %v1611_v12, %v2756_v42  ;;  %v1612_v15 = vpop.f32.mrb[16].mxu1  ;;  %1069 = vadd.xlane.f32.xlu0 %v1047_v3 }
 0x26e   : > { %v1613_v20 = vpop.f32.mrb[17].mxu1 }
 0x26f   : > { %v1614_v26 = vadd.f32 %v1613_v20, %v1612_v15  ;;  %v1048_v41 = vmul.f32 %v2794_v18, %v2794_v18 }
 0x271   : > { %v2800_v43 = vadd.f32 %v1614_v26, %v2756_v42  ;;  %v1615_v35 = vpop.f32.mrb[18].mxu1  ;;  %1071 = vadd.xlane.f32.xlu1 %v1048_v41 }
 0x272   : > { %v1616_v45 = vpop.f32.mrb[19].mxu1 }
 0x273   : > { %v1617_v46 = vadd.f32 %v1616_v45, %v1615_v35  ;;  %v1049_v47 = vmul.f32 %v2800_v43, %v2800_v43 }
 0x275   : > { %v2805_v25 = vadd.f32 %v1617_v46, %v2756_v42  ;;  %v1618_v48 = vpop.f32.mrb[20].mxu1  ;;  %1073 = vadd.xlane.f32.xlu0 %v1049_v47 }
 0x276   : > { %v1619_v17 = vpop.f32.mrb[21].mxu1 }
 0x277   : > { %v1620_v50 = vadd.f32 %v1619_v17, %v1618_v48  ;;  %v1050_v27 = vmul.f32 %v2805_v25, %v2805_v25 }
 0x279   : > { %v2810_v51 = vadd.f32 %v1620_v50, %v2756_v42  ;;  %v1621_v53 = vpop.f32.mrb[22].mxu1  ;;  %1075 = vadd.xlane.f32.xlu1 %v1050_v27 }
 0x27a   : > { %v1622_v0 = vpop.f32.mrb[23].mxu1 }
 0x27b   : > { %v1623_v57 = vadd.f32 %v1622_v0, %v1621_v53  ;;  %v1051_v58 = vmul.f32 %v2810_v51, %v2810_v51 }
 0x27d   : > { %v2817_v55 = vadd.f32 %v1623_v57, %v2756_v42  ;;  %v1624_v61 = vpop.f32.mrb[24].mxu1  ;;  %1077 = vadd.xlane.f32.xlu0 %v1051_v58 }
 0x27e   : > { %v1625_v63 = vpop.f32.mrb[25].mxu1 }
 0x27f   : > { %v1626_v1 = vadd.f32 %v1625_v63, %v1624_v61  ;;  %v1052_v2 = vmul.f32 %v2817_v55, %v2817_v55 }
 0x281   : > { %v2825_v7 = vadd.f32 %v1626_v1, %v2756_v42  ;;  %v1627_v38 = vpop.f32.mrb[26].mxu1  ;;  %1079 = vadd.xlane.f32.xlu1 %v1052_v2 }
 0x282   : > { %v1628_v39 = vpop.f32.mrb[27].mxu1 }
 0x283   : > { %v1629_v9 = vadd.f32 %v1628_v39, %v1627_v38  ;;  %v1053_v29 = vmul.f32 %v2825_v7, %v2825_v7 }
 0x285   : > { %v2831_v10 = vadd.f32 %v1629_v9, %v2756_v42  ;;  %v1630_v11 = vpop.f32.mrb[28].mxu1  ;;  %1081 = vadd.xlane.f32.xlu0 %v1053_v29 }
 0x286   : > { %v1631_v40 = vpop.f32.mrb[29].mxu1 }
 0x287   : > { %v1632_v4 = vadd.f32 %v1631_v40, %v1630_v11  ;;  %v1054_v30 = vmul.f32 %v2831_v10, %v2831_v10 }
 0x289   : > { %v2836_v12 = vadd.f32 %v1632_v4, %v2756_v42  ;;  %v1633_v3 = vpop.f32.mrb[30].mxu1  ;;  %1083 = vadd.xlane.f32.xlu1 %v1054_v30 }
 0x28a   : > { %v1634_v5 = vpop.f32.mrb[31].mxu1 }
 0x28b   : > { %v1635_v13 = vadd.f32 %v1634_v5, %v1633_v3  ;;  %v1055_v14 = vmul.f32 %v2836_v12, %v2836_v12 }
 0x28d   : > { %v2841_v15 = vadd.f32 %v1635_v13, %v2756_v42  ;;  %1085 = vadd.xlane.f32.xlu0 %v1055_v14 }
 0x28f   : > { %v1056_v19 = vmul.f32 %v2841_v15, %v2841_v15 }
 0x291   : > { %1087 = vadd.xlane.f32.xlu1 %v1056_v19 }
 0x292   : > { %2015 = shalt.err (!%p2012_p11)
}
 0x293   : > { %s2016_s18 = scalar_lea.hbm %s2851_s15, 2048  ;;  %s2020_s25 = scalar_lea.hbm %s2983_s5, 4096 }
 0x294   : > { %p2017_p7 = scmp.ne.s32.totalorder %s2851_s15, %s2016_s18  ;;  %p2021_p2 = scmp.lt.u32.totalorder %s2851_s15, %s2983_s5 }
 0x295   : > { %p2022_p1 = scmp.lt.u32.totalorder %s2020_s25, %s2016_s18  ;;  %p2024_p6 = scmp.lt.u32.totalorder %s2016_s18, %s2851_s15 }
 0x296   : > { %p2018_p3 = pnand %p2017_p7, %p3011_p8 }
 0x297   : > { %p2023_p0 = por %p2022_p1, %p2021_p2 }
 0x298   : > { %p2019_p5 = pneg %p2018_p3 }
 0x299   : > { %p2025_p9 = por %p2024_p6, %p2023_p0 }
 0x29b   : > { %p2026_p12 = pnand %p2025_p9, %p2019_p5 }
 0x29d   : > { %2029 = shalt.err (!%p2026_p12)
}
 0x29e   : > { %s2131_s13 = smov 128   ;;  %s2132_s8 = smov 8  }
 0x29f   : > { %1706 = dma.vmem_to_hbm [thread:$0]  (%p3011_p8), %s2854_s23, 2048, %s2851_s15, %s1298_s11, %s2131_s13, %s2131_s13, %s2132_s8  }
 0x2a0   : > { %s2885_s14 = scalar_lea.vmem [#allocation9], %s2374_s20  ;;  %s2923_s23 = scalar_lea.hbm %s2984_s6, %s1554_s28 }
 0x2a1   : > { %s1336_s20 = sshll.u32 %s2885_s14, 4  ;;  %s1303_s11 = scalar_lea.sflag [#allocation10], %s2371_s29  ;;  %s2925_s20 = int_to_ptr.vmem [resolvable:$true] %s1336_s20 }
 0x2a2   : > { %s2030_s7 = scalar_lea.vmem %s2925_s20, 2048  ;;  %s2133_s19 = smov [#allocation9]  }
 0x2a3   : > { %p2031_p4 = scmp.ne.s32.totalorder %s2925_s20, %s2030_s7  ;;  %s2034_s27 = sshll.u32 %s2133_s19, 4  ;;  %s2035_s27 = int_to_ptr.vmem [resolvable:$false] %s2034_s27 }
 0x2a4   : > { %s2036_s24 = scalar_lea.vmem %s2035_s27, 4096  ;;  %p2037_p11 = scmp.lt.s32.totalorder %s2925_s20, %s2035_s27 }
 0x2a5   : > { %p2032_p10 = pnand %p2031_p4, %p3011_p8  ;;  %p2038_p7 = scmp.lt.s32.totalorder %s2036_s24, %s2030_s7 }
 0x2a7   : > { %p2033_p13 = pneg %p2032_p10  ;;  %p2039_p3 = por %p2038_p7, %p2037_p11 }
 0x2a9   : > { %p2040_p5 = pnand %p2039_p3, %p2033_p13 }
 0x2e2   : > { %v1058_v42 = vpop.xlane.xlu0 %1057 }
 0x2e3   : > { %1848 = vrsqrt.f32 %v1058_v42  ;;  %vm1091_vm0 = vcmp.eq.f32.partialorder %v1058_v42, inf  ;;  %v1094_v22 = vand.u32 2147483648, %v1058_v42  ;;  %vm1093_vm1 = vcmp.eq.f32.partialorder %v1058_v42, 0.0 }
 0x2e6   : > { %v1060_v31 = vpop.xlane.xlu1 %1059 }
 0x2e7   : > { %1850 = vrsqrt.f32 %v1060_v31  ;;  %vm1098_vm2 = vcmp.eq.f32.partialorder %v1060_v31, inf  ;;  %v1101_v45 = vand.u32 2147483648, %v1060_v31  ;;  %vm1100_vm3 = vcmp.eq.f32.partialorder %v1060_v31, 0.0 }
 0x2ea   : > { %v1062_v16 = vpop.xlane.xlu0 %1061 }
 0x2eb   : > { %1852 = vrsqrt.f32 %v1062_v16  ;;  %vm1105_vm4 = vcmp.eq.f32.partialorder %v1062_v16, inf  ;;  %v1108_v27 = vand.u32 2147483648, %v1062_v16  ;;  %vm1107_vm5 = vcmp.eq.f32.partialorder %v1062_v16, 0.0 }
 0x2ed   : > { %v1849_v20 = vpop.eup %1848 }
 0x2ee   : > { %v1090_v32 = vmul.f32 %v1849_v20, %v1058_v42  ;;  %v1064_v21 = vpop.xlane.xlu1 %1063 }
 0x2ef   : > { %1854 = vrsqrt.f32 %v1064_v21  ;;  %vm1112_vm6 = vcmp.eq.f32.partialorder %v1064_v21, inf  ;;  %v1115_v60 = vand.u32 2147483648, %v1064_v21  ;;  %vm1114_vm7 = vcmp.eq.f32.partialorder %v1064_v21, 0.0 }
 0x2f0   : > { %v1092_v26 = vsel %vm1091_vm0, %v1058_v42, %v1090_v32 }
 0x2f1   : > { %v1851_v41 = vpop.eup %1850  ;;  %v1095_v33 = vsel %vm1093_vm1, %v1094_v22, %v1092_v26 }
 0x2f2   : > { %v1201_v34 = vadd.f32 1e-07, %v1095_v33  ;;  %v1097_v35 = vmul.f32 %v1851_v41, %v1060_v31  ;;  %v1066_v36 = vpop.xlane.xlu0 %1065 }
 0x2f3   : > { %1856 = vrsqrt.f32 %v1066_v36  ;;  %vm1119_vm8 = vcmp.eq.f32.partialorder %v1066_v36, inf  ;;  %v1122_v39 = vand.u32 2147483648, %v1066_v36  ;;  %vm1121_vm9 = vcmp.eq.f32.partialorder %v1066_v36, 0.0 }
 0x2f4   : > { %1858 = vrcp.f32 %v1201_v34  ;;  %v1099_v23 = vsel %vm1098_vm2, %v1060_v31, %v1097_v35 }
 0x2f5   : > { %v1853_v46 = vpop.eup %1852  ;;  %v1102_v47 = vsel %vm1100_vm3, %v1101_v45, %v1099_v23 }
 0x2f6   : > { %v1202_v48 = vadd.f32 1e-07, %v1102_v47  ;;  %v1104_v17 = vmul.f32 %v1853_v46, %v1062_v16  ;;  %v1068_v50 = vpop.xlane.xlu1 %1067 }
 0x2f7   : > { %1860 = vrsqrt.f32 %v1068_v50  ;;  %vm1126_vm10 = vcmp.eq.f32.partialorder %v1068_v50, inf  ;;  %vm1128_vm11 = vcmp.eq.f32.partialorder %v1068_v50, 0.0 }
 0x2f8   : > { %1862 = vrcp.f32 %v1202_v48  ;;  %v1106_v53 = vsel %vm1105_vm4, %v1062_v16, %v1104_v17 }
 0x2f9   : > { %v1855_v54 = vpop.eup %1854  ;;  %v1109_v0 = vsel %vm1107_vm5, %v1108_v27, %v1106_v53 }
 0x2fa   : > { %v1203_v56 = vadd.f32 1e-07, %v1109_v0  ;;  %v1111_v57 = vmul.f32 %v1855_v54, %v1064_v21  ;;  %v1070_v58 = vpop.xlane.xlu0 %1069 }
 0x2fb   : > { %1864 = vrsqrt.f32 %v1070_v58  ;;  %vm1133_vm12 = vcmp.eq.f32.partialorder %v1070_v58, inf  ;;  %vm1135_vm13 = vcmp.eq.f32.partialorder %v1070_v58, 0.0 }
 0x2fc   : > { %1866 = vrcp.f32 %v1203_v56  ;;  %v1113_v24 = vsel %vm1112_vm6, %v1064_v21, %v1111_v57  ;;  %v1136_v21 = vand.u32 2147483648, %v1070_v58 }
 0x2fd   : > { %v1857_v61 = vpop.eup %1856  ;;  %v1116_v62 = vsel %vm1114_vm7, %v1115_v60, %v1113_v24 }
 0x2fe   : > { %v1859_v63 = vpop.eup %1858  ;;  %v1204_v1 = vadd.f32 1e-07, %v1116_v62  ;;  %v1118_v2 = vmul.f32 %v1857_v61, %v1066_v36  ;;  %v1072_v6 = vpop.xlane.xlu1 %1071 }
 0x2ff   : > { %v1265_v38 = vmul.f32 %v1859_v63, %v2759_v44  ;;  %1868 = vrsqrt.f32 %v1072_v6  ;;  %v1129_v44 = vand.u32 2147483648, %v1068_v50  ;;  %vm1140_vm14 = vcmp.eq.f32.partialorder %v1072_v6, inf }
 0x300   : > { %1870 = vrcp.f32 %v1204_v1  ;;  %v1120_v9 = vsel %vm1119_vm8, %v1066_v36, %v1118_v2  ;;  %v1143_v45 = vand.u32 2147483648, %v1072_v6  ;;  %vm1142_vm15 = vcmp.eq.f32.partialorder %v1072_v6, 0.0 }
 0x301   : > { %v1861_v29 = vpop.eup %1860  ;;  %1281 = vst [vmem:[%s2885_s14] sm:$0xff] %v1265_v38  ;;  %v1123_v11 = vsel %vm1121_vm9, %v1122_v39, %v1120_v9 }
 0x302   : > { %v1863_v40 = vpop.eup %1862  ;;  %v1205_v4 = vadd.f32 1e-07, %v1123_v11  ;;  %v1125_v30 = vmul.f32 %v1861_v29, %v1068_v50  ;;  %v1074_v3 = vpop.xlane.xlu0 %1073 }
 0x303   : > { %v1266_v5 = vmul.f32 %v1863_v40, %v2764_v37  ;;  %1872 = vrsqrt.f32 %v1074_v3  ;;  %vm1147_vm0 = vcmp.eq.f32.partialorder %v1074_v3, inf  ;;  %v1150_v53 = vand.u32 2147483648, %v1074_v3 }
 0x304   : > { %1874 = vrcp.f32 %v1205_v4  ;;  %v1127_v13 = vsel %vm1126_vm10, %v1068_v50, %v1125_v30  ;;  %vm1149_vm1 = vcmp.eq.f32.partialorder %v1074_v3, 0.0 }
 0x305   : > { %v1865_v14 = vpop.eup %1864  ;;  %1282 = vst [vmem:[%s2885_s14 + $0x8] sm:$0xff] %v1266_v5  ;;  %v1130_v19 = vsel %vm1128_vm11, %v1129_v44, %v1127_v13 }
 0x306   : > { %v1867_v42 = vpop.eup %1866  ;;  %v1206_v31 = vadd.f32 1e-07, %v1130_v19  ;;  %v1132_v16 = vmul.f32 %v1865_v14, %v1070_v58  ;;  %v1076_v20 = vpop.xlane.xlu1 %1075 }
 0x307   : > { %v1267_v32 = vmul.f32 %v1867_v42, %v2769_v49  ;;  %1876 = vrsqrt.f32 %v1076_v20  ;;  %vm1154_vm2 = vcmp.eq.f32.partialorder %v1076_v20, inf  ;;  %v1157_v61 = vand.u32 2147483648, %v1076_v20 }
 0x308   : > { %1878 = vrcp.f32 %v1206_v31  ;;  %v1134_v37 = vsel %vm1133_vm12, %v1070_v58, %v1132_v16  ;;  %vm1156_vm3 = vcmp.eq.f32.partialorder %v1076_v20, 0.0 }
 0x309   : > { %v1869_v22 = vpop.eup %1868  ;;  %1283 = vst [vmem:[%s2885_s14 + $0x10] sm:$0xff] %v1267_v32  ;;  %v1137_v26 = vsel %vm1135_vm13, %v1136_v21, %v1134_v37 }
 0x30a   : > { %v1871_v41 = vpop.eup %1870  ;;  %v1207_v33 = vadd.f32 1e-07, %v1137_v26  ;;  %v1139_v34 = vmul.f32 %v1869_v22, %v1072_v6  ;;  %v1078_v35 = vpop.xlane.xlu0 %1077 }
 0x30b   : > { %v1268_v36 = vmul.f32 %v1871_v41, %v2774_v52  ;;  %1880 = vrsqrt.f32 %v1078_v35  ;;  %vm1161_vm4 = vcmp.eq.f32.partialorder %v1078_v35, inf  ;;  %v1164_v9 = vand.u32 2147483648, %v1078_v35 }
 0x30c   : > { %1882 = vrcp.f32 %v1207_v33  ;;  %v1141_v49 = vsel %vm1140_vm14, %v1072_v6, %v1139_v34  ;;  %vm1163_vm5 = vcmp.eq.f32.partialorder %v1078_v35, 0.0 }
 0x30d   : > { %v1873_v23 = vpop.eup %1872  ;;  %1284 = vst [vmem:[%s2885_s14 + $0x18] sm:$0xff] %v1268_v36  ;;  %v1144_v46 = vsel %vm1142_vm15, %v1143_v45, %v1141_v49 }
 0x30e   : > { %v1875_v47 = vpop.eup %1874  ;;  %v1208_v48 = vadd.f32 1e-07, %v1144_v46  ;;  %v1146_v17 = vmul.f32 %v1873_v23, %v1074_v3  ;;  %v1080_v50 = vpop.xlane.xlu1 %1079 }
 0x30f   : > { %v1269_v27 = vmul.f32 %v1875_v47, %v2779_v59  ;;  %1884 = vrsqrt.f32 %v1080_v50  ;;  %vm1168_vm6 = vcmp.eq.f32.partialorder %v1080_v50, inf  ;;  %v1171_v44 = vand.u32 2147483648, %v1080_v50 }
 0x310   : > { %1886 = vrcp.f32 %v1208_v48  ;;  %v1148_v52 = vsel %vm1147_vm0, %v1074_v3, %v1146_v17  ;;  %vm1170_vm7 = vcmp.eq.f32.partialorder %v1080_v50, 0.0 }
 0x311   : > { %v1877_v54 = vpop.eup %1876  ;;  %1285 = vst [vmem:[%s2885_s14 + $0x20] sm:$0xff] %v1269_v27  ;;  %v1151_v0 = vsel %vm1149_vm1, %v1150_v53, %v1148_v52 }
 0x312   : > { %v1879_v56 = vpop.eup %1878  ;;  %v1209_v57 = vadd.f32 1e-07, %v1151_v0  ;;  %v1153_v58 = vmul.f32 %v1877_v54, %v1076_v20  ;;  %v1082_v60 = vpop.xlane.xlu0 %1081 }
 0x313   : > { %v1270_v24 = vmul.f32 %v1879_v56, %v2784_v28  ;;  %1888 = vrsqrt.f32 %v1082_v60  ;;  %vm1175_vm8 = vcmp.eq.f32.partialorder %v1082_v60, inf  ;;  %v1178_v32 = vand.u32 2147483648, %v1082_v60 }
 0x314   : > { %1890 = vrcp.f32 %v1209_v57  ;;  %v1155_v59 = vsel %vm1154_vm2, %v1076_v20, %v1153_v58  ;;  %vm1177_vm9 = vcmp.eq.f32.partialorder %v1082_v60, 0.0 }
 0x315   : > { %v1881_v62 = vpop.eup %1880  ;;  %1286 = vst [vmem:[%s2885_s14 + $0x28] sm:$0xff] %v1270_v24  ;;  %v1158_v63 = vsel %vm1156_vm3, %v1157_v61, %v1155_v59 }
 0x316   : > { %v1883_v1 = vpop.eup %1882  ;;  %v1210_v2 = vadd.f32 1e-07, %v1158_v63  ;;  %v1160_v6 = vmul.f32 %v1881_v62, %v1078_v35  ;;  %v1084_v38 = vpop.xlane.xlu1 %1083 }
 0x317   : > { %v1271_v39 = vmul.f32 %v1883_v1, %v2789_v8  ;;  %1892 = vrsqrt.f32 %v1084_v38  ;;  %vm1182_vm10 = vcmp.eq.f32.partialorder %v1084_v38, inf  ;;  %v1185_v34 = vand.u32 2147483648, %v1084_v38 }
 0x318   : > { %1894 = vrcp.f32 %v1210_v2  ;;  %v1162_v28 = vsel %vm1161_vm4, %v1078_v35, %v1160_v6  ;;  %vm1184_vm11 = vcmp.eq.f32.partialorder %v1084_v38, 0.0 }
 0x319   : > { %v1885_v29 = vpop.eup %1884  ;;  %1287 = vst [vmem:[%s2885_s14 + $0x30] sm:$0xff] %v1271_v39  ;;  %v1165_v11 = vsel %vm1163_vm5, %v1164_v9, %v1162_v28 }
 0x31a   : > { %v1887_v40 = vpop.eup %1886  ;;  %v1211_v4 = vadd.f32 1e-07, %v1165_v11  ;;  %v1167_v30 = vmul.f32 %v1885_v29, %v1080_v50  ;;  %v1086_v3 = vpop.xlane.xlu0 %1085 }
 0x31b   : > { %v1272_v5 = vmul.f32 %v1887_v40, %v2794_v18  ;;  %1896 = vrsqrt.f32 %v1086_v3  ;;  %vm1189_vm12 = vcmp.eq.f32.partialorder %v1086_v3, inf  ;;  %v1192_v47 = vand.u32 2147483648, %v1086_v3 }
 0x31c   : > { %1898 = vrcp.f32 %v1211_v4  ;;  %v1169_v8 = vsel %vm1168_vm6, %v1080_v50, %v1167_v30  ;;  %vm1191_vm13 = vcmp.eq.f32.partialorder %v1086_v3, 0.0 }
 0x31d   : > { %v1889_v13 = vpop.eup %1888  ;;  %1288 = vst [vmem:[%s2885_s14 + $0x38] sm:$0xff] %v1272_v5  ;;  %v1172_v14 = vsel %vm1170_vm7, %v1171_v44, %v1169_v8 }
 0x31e   : > { %v1891_v19 = vpop.eup %1890  ;;  %v1212_v42 = vadd.f32 1e-07, %v1172_v14  ;;  %v1174_v31 = vmul.f32 %v1889_v13, %v1082_v60  ;;  %v1088_v16 = vpop.xlane.xlu1 %1087 }
 0x31f   : > { %v1273_v20 = vmul.f32 %v1891_v19, %v2800_v43  ;;  %1900 = vrsqrt.f32 %v1088_v16  ;;  %vm1196_vm14 = vcmp.eq.f32.partialorder %v1088_v16, inf  ;;  %v1199_v54 = vand.u32 2147483648, %v1088_v16 }
 0x320   : > { %1902 = vrcp.f32 %v1212_v42  ;;  %v1176_v18 = vsel %vm1175_vm8, %v1082_v60, %v1174_v31  ;;  %vm1198_vm15 = vcmp.eq.f32.partialorder %v1088_v16, 0.0 }
 0x321   : > { %v1893_v21 = vpop.eup %1892  ;;  %1289 = vst [vmem:[%s2885_s14 + $0x40] sm:$0xff] %v1273_v20  ;;  %v1179_v37 = vsel %vm1177_vm9, %v1178_v32, %v1176_v18 }
 0x322   : > { %v1895_v22 = vpop.eup %1894  ;;  %v1213_v26 = vadd.f32 1e-07, %v1179_v37  ;;  %v1181_v41 = vmul.f32 %v1893_v21, %v1084_v38 }
 0x323   : > { %v1274_v33 = vmul.f32 %v1895_v22, %v2805_v25 }
 0x324   : > { %1904 = vrcp.f32 %v1213_v26  ;;  %v1183_v43 = vsel %vm1182_vm10, %v1084_v38, %v1181_v41 }
 0x325   : > { %v1897_v35 = vpop.eup %1896  ;;  %1290 = vst [vmem:[%s2885_s14 + $0x48] sm:$0xff] %v1274_v33  ;;  %v1186_v36 = vsel %vm1184_vm11, %v1185_v34, %v1183_v43 }
 0x326   : > { %v1899_v45 = vpop.eup %1898  ;;  %v1214_v49 = vadd.f32 1e-07, %v1186_v36  ;;  %v1188_v23 = vmul.f32 %v1897_v35, %v1086_v3 }
 0x327   : > { %v1275_v46 = vmul.f32 %v1899_v45, %v2810_v51 }
 0x328   : > { %1906 = vrcp.f32 %v1214_v49  ;;  %v1190_v48 = vsel %vm1189_vm12, %v1086_v3, %v1188_v23 }
 0x329   : > { %v1901_v25 = vpop.eup %1900  ;;  %1291 = vst [vmem:[%s2885_s14 + $0x50] sm:$0xff] %v1275_v46  ;;  %v1193_v17 = vsel %vm1191_vm13, %v1192_v47, %v1190_v48 }
 0x32a   : > { %v1903_v50 = vpop.eup %1902  ;;  %v1215_v27 = vadd.f32 1e-07, %v1193_v17  ;;  %v1195_v53 = vmul.f32 %v1901_v25, %v1088_v16 }
 0x32b   : > { %v1276_v52 = vmul.f32 %v1903_v50, %v2817_v55 }
 0x32c   : > { %1908 = vrcp.f32 %v1215_v27  ;;  %v1197_v51 = vsel %vm1196_vm14, %v1088_v16, %v1195_v53 }
 0x32d   : > { %1292 = vst [vmem:[%s2885_s14 + $0x58] sm:$0xff] %v1276_v52  ;;  %v1200_v0 = vsel %vm1198_vm15, %v1199_v54, %v1197_v51 }
 0x32e   : > { %v1905_v56 = vpop.eup %1904  ;;  %v1216_v57 = vadd.f32 1e-07, %v1200_v0 }
 0x32f   : > { %v1277_v58 = vmul.f32 %v1905_v56, %v2825_v7 }
 0x330   : > { %1910 = vrcp.f32 %v1216_v57 }
 0x331   : > { %1293 = vst [vmem:[%s2885_s14 + $0x60] sm:$0xff] %v1277_v58 }
 0x332   : > { %v1907_v55 = vpop.eup %1906 }
 0x333   : > { %v1278_v60 = vmul.f32 %v1907_v55, %v2831_v10 }
 0x335   : > { %1294 = vst [vmem:[%s2885_s14 + $0x68] sm:$0xff] %v1278_v60 }
 0x336   : > { %v1909_v24 = vpop.eup %1908 }
 0x337   : > { %v1279_v61 = vmul.f32 %v1909_v24, %v2836_v12 }
 0x339   : > { %1295 = vst [vmem:[%s2885_s14 + $0x70] sm:$0xff] %v1279_v61 }
 0x33a   : > { %v1911_v59 = vpop.eup %1910 }
 0x33b   : > { %v1280_v62 = vmul.f32 %v1911_v59, %v2841_v15 }
 0x33d   : > { %1296 = vst [vmem:[%s2885_s14 + $0x78] sm:$0xff] %v1280_v62 }
 0x33e   : > { %2043 = shalt.err (!%p2040_p5)
}
 0x33f   : > { %s2044_s28 = scalar_lea.hbm %s2923_s23, 2048  ;;  %s2048_s30 = scalar_lea.hbm %s2984_s6, 4096 }
 0x340   : > { %p2045_p2 = scmp.ne.s32.totalorder %s2923_s23, %s2044_s28  ;;  %p2049_p6 = scmp.lt.u32.totalorder %s2923_s23, %s2984_s6 }
 0x341   : > { %p2050_p9 = scmp.lt.u32.totalorder %s2048_s30, %s2044_s28  ;;  %p2052_p4 = scmp.lt.u32.totalorder %s2044_s28, %s2923_s23 }
 0x342   : > { %p2046_p1 = pnand %p2045_p2, %p3011_p8 }
 0x343   : > { %p2051_p12 = por %p2050_p9, %p2049_p6 }
 0x344   : > { %p2047_p0 = pneg %p2046_p1 }
 0x345   : > { %p2053_p10 = por %p2052_p4, %p2051_p12 }
 0x347   : > { %p2054_p13 = pnand %p2053_p10, %p2047_p0 }
 0x349   : > { %2057 = shalt.err (!%p2054_p13)
}
 0x34a   : > { %1707 = dma.vmem_to_hbm [thread:$0]  (%p3011_p8), %s2925_s20, 2048, %s2923_s23, %s1303_s11, %s2131_s13, %s2131_s13, %s2132_s8  }
 0x34b PF: > { %s3012_s1 = sld [smem:[#allocation19_spill]]  ;;  %s1351_s17 = sand.u32 1, %s2100_s21  }
 0x34c   : > { %p3014_p7 = scmp.ge.s32.totalorder %s2120_s26, 2  ;;  %s1352_s14 = scalar_lea.sflag [#allocation4], %s1351_s17 }
 0x351   : > { %p3013_p11 = scmp.ne.s32.totalorder %s3012_s1, 0 }
 0x353   : > { %p1721_p3 = pnand %p3014_p7, %p3013_p11 }
 0x355   : > { %2091 = dma.done.wait (!%p1721_p3), %s1352_s14, 2048  }
 0x356   : > { %2093 = vsyncadd (!%p1721_p3), %s1352_s14, 4294965248  ;;  %s1361_s10 = scalar_lea.sflag [#allocation10], %s1351_s17 }
 0x357   : > { %2095 = dma.done.wait (!%p1721_p3), %s1361_s10, 2048  }
 0x358   : > { %2097 = vsyncadd (!%p1721_p3), %s1361_s10, 4294965248  ;;  %s29_s26 = sadd.s32 1, %s2120_s26   ;;  %s3015_s29 = sld [smem:[#allocation15_spill]] }
 0x359   : > { %p26_p5 = scmp.ge.s32.totalorder %s29_s26, 4   ;;  %s3016_s23 = sld [smem:[#allocation18_spill]] }
 0x35a   : > { %s3017_s24 = sld [smem:[#allocation16_spill]]  ;;  %s3018_s25 = sld [smem:[#allocation17_spill]] }
 0x35b   : > { %s3019_s21 = smov %s2104_s22  ;;  %28 = sbr.rel (!%p26_p5) target bundleno = 12 (0xc), region = 132 }
 0x35e   : > { %s3020_s22 = smov %s3015_s29 }
 0x362   :  { %1366 = vsyncpa [#allocation3], 1 }
 0x363   :  { %1368 = vsyncpa [#allocation3 + $0x1], 1 }
 0x364   :  { %1369 = vsyncpa [#allocation6], 1 }
 0x365   :  { %1371 = vsyncpa [#allocation6 + $0x1], 1 }
 0x366   :  { %1372 = vsyncpa [#allocation4], 1 }
 0x367   :  { %1374 = vsyncpa [#allocation4 + $0x1], 1 }
 0x368   :  { %1375 = vsyncpa [#allocation10], 1 }
 0x369   :  { %1377 = vsyncpa [#allocation10 + $0x1], 1 }

</bundles_post_ra>
